<compile_context>
chip_gen: v6e
topology: v6e:2x2x1
jax: 0.10.0
libtpu: 0.0.40
codegen_flags: <defaults>
</compile_context>

<pallas_src>
import jax
import jax.numpy as jnp
from jax import lax
from jax.experimental import pallas as pl
from jax.experimental.pallas import tpu as pltpu

NUM_CLASSES = 8
L = 17           # sequence length implied by Flatten -> Linear(1088, 272): 1088 = 64*17
C_IN = 2
C1 = 16
C2 = 64
H1 = 272
BN_EPS = 1e-5
NC_PAD = 128     # lane-dense output width; sliced back to num_classes in the wrapper


def archi_kernel(x_ref, w1_ref, b1_ref, w2_ref, b2_ref,
                 fw1_ref, fb1_ref, fw2_ref, fb2_ref, out_ref):
    # Conv1d(2,16) + BN1 + ReLU (bias/BN folded into w1/b1; output kept in the
    # zero-padded layout, pad columns stay exactly 0).  Dropout = identity.
    x = x_ref[...]                                                   # (TB, 38) f32
    h1 = jnp.dot(x, w1_ref[...], preferred_element_type=jnp.float32) + b1_ref[...]
    h1 = jnp.maximum(h1, 0.0)                                        # (TB, (L+2)*C1)

    # Conv1d(16,64) + BN2 + ReLU, output directly in flatten column order l*C2+c2.
    h2 = jnp.dot(h1.astype(w2_ref.dtype), w2_ref[...],
                 preferred_element_type=jnp.float32) + b2_ref[...]
    h2 = jnp.maximum(h2, 0.0)                                        # (TB, L*C2)

    # Flatten + Linear(1088, 272) + ReLU (Dropout = identity in eval).
    y = jnp.dot(h2.astype(fw1_ref.dtype), fw1_ref[...],
                preferred_element_type=jnp.float32) + fb1_ref[...]
    y = jnp.maximum(y, 0.0)                                          # (TB, H1)

    # Linear(272, num_classes), padded to NC_PAD lanes for a dense store.
    out_ref[...] = jnp.dot(y, fw2_ref[...],
                           preferred_element_type=jnp.float32) + fb2_ref[...]


def _bn_scale_shift(p, prefix):
    scale = p[prefix + "_gamma"] / jnp.sqrt(p[prefix + "_var"] + BN_EPS)
    shift = p[prefix + "_beta"] - p[prefix + "_mean"] * scale
    return scale, shift


def _prepare_weights(params, num_classes):
    s1, t1 = _bn_scale_shift(params, "bn1")
    s2, t2 = _bn_scale_shift(params, "bn2")

    # Conv weights folded with the BN scale, re-laid as (k, cin, cout).
    w1f = jnp.transpose(params["conv1_w"], (2, 1, 0)) * s1[None, None, :]   # (3, C_IN, C1)
    b1f = params["conv1_b"] * s1 + t1                                        # (C1,)
    w2f = jnp.transpose(params["conv2_w"], (2, 1, 0)) * s2[None, None, :]   # (3, C1, C2)
    b2f = params["conv2_b"] * s2 + t2                                        # (C2,)

    # Banded dense conv1 weight: (L+2)*C_IN -> (L+2)*C1.  Input/output columns are
    # position-major, channel-minor over zero-padded positions p = 0..L+1; the two
    # pad output positions get zero columns so conv2 can consume h1 directly.
    w1d = jnp.zeros(((L + 2) * C_IN, (L + 2) * C1), jnp.float32)
    for l in range(L):
        po = l + 1                                  # padded output position
        for k in range(3):
            pi = l + k                              # padded input position read
            w1d = w1d.at[pi * C_IN:(pi + 1) * C_IN,
                         po * C1:(po + 1) * C1].set(w1f[k])
    b1d = jnp.zeros((L + 2, C1), jnp.float32).at[1:L + 1, :].set(b1f)
    b1d = b1d.reshape(1, (L + 2) * C1)

    # Banded dense conv2 weight: (L+2)*C1 -> L*C2, output column index l*C2 + c2.
    w2d = jnp.zeros(((L + 2) * C1, L * C2), jnp.float32)
    for l in range(L):
        for k in range(3):
            pi = l + k
            w2d = w2d.at[pi * C1:(pi + 1) * C1,
                         l * C2:(l + 1) * C2].set(w2f[k])
    b2d = jnp.tile(b2f, (L,)).reshape(1, L * C2)

    # torch Flatten of (N, C2, L) uses feature index c2*L + l; re-lay fc1_w so it
    # contracts against the kernel's l*C2 + c2 column layout.
    fw1 = jnp.transpose(params["fc1_w"].reshape(H1, C2, L), (2, 1, 0)).reshape(L * C2, H1)
    fb1 = params["fc1_b"].reshape(1, H1)

    assert num_classes <= NC_PAD
    fw2 = jnp.zeros((H1, NC_PAD), jnp.float32).at[:, :num_classes].set(params["fc2_w"].T)
    fb2 = jnp.zeros((1, NC_PAD), jnp.float32).at[:, :num_classes].set(params["fc2_b"][None, :])

    # bf16 only at the two large matmul inputs; accumulation stays f32 in-kernel.
    return (w1d, b1d,
            w2d.astype(jnp.bfloat16), b2d,
            fw1.astype(jnp.bfloat16), fb1,
            fw2, fb2)


def archi_forward(x, params, *, batch_tile=256):
    """x: (N, 2, 17) float32 in PyTorch NCL layout -> (N, num_classes) logits."""
    n, c_in, seq = x.shape
    assert (c_in, seq) == (C_IN, L)
    num_classes = params["fc2_w"].shape[0]

    # Batch tile: multiple of 8 sublanes, capped at batch_tile (256 default;
    # multiples of 128/256 align MXU M tiles on v5e / v6e+v7x at realistic N).
    tb = min(batch_tile, max(8, -(-n // 8) * 8))
    n_pad = -(-n // tb) * tb

    # (N, L, C) layout, zero-padded along L (conv padding=1) and along the batch,
    # flattened to (N_pad, (L+2)*C_IN) with position-major, channel-minor columns.
    xp = jnp.transpose(x, (0, 2, 1)).astype(jnp.float32)
    xp = jnp.pad(xp, ((0, n_pad - n), (1, 1), (0, 0)))
    xp = xp.reshape(n_pad, (L + 2) * C_IN)

    weights = _prepare_weights(params, num_classes)

    def wspec(a):
        return pl.BlockSpec(a.shape, lambda i: (0, 0))   # resident across grid steps

    out = pl.pallas_call(
        archi_kernel,
        out_shape=jax.ShapeDtypeStruct((n_pad, NC_PAD), jnp.float32),
        grid=(n_pad // tb,),
        in_specs=[pl.BlockSpec((tb, (L + 2) * C_IN), lambda i: (i, 0))]
                 + [wspec(a) for a in weights],
        out_specs=pl.BlockSpec((tb, NC_PAD), lambda i: (i, 0)),
        compiler_params=pltpu.CompilerParams(
            dimension_semantics=("parallel",)),
    )(xp, *weights)

    return out[:n, :num_classes]


def init_params(key, num_classes=NUM_CLASSES):
    ks = jax.random.split(key, 16)

    def rnd(k, shape, scale):
        return scale * jax.random.normal(k, shape, jnp.float32)

    return {
        "conv1_w": rnd(ks[0], (C1, C_IN, 3), 0.3),
        "conv1_b": rnd(ks[1], (C1,), 0.1),
        "bn1_gamma": 1.0 + rnd(ks[2], (C1,), 0.1),
        "bn1_beta": rnd(ks[3], (C1,), 0.1),
        "bn1_mean": rnd(ks[4], (C1,), 0.1),
        "bn1_var": 1.0 + 0.1 * jax.nn.sigmoid(rnd(ks[5], (C1,), 1.0)),
        "conv2_w": rnd(ks[6], (C2, C1, 3), 0.1),
        "conv2_b": rnd(ks[7], (C2,), 0.1),
        "bn2_gamma": 1.0 + rnd(ks[8], (C2,), 0.1),
        "bn2_beta": rnd(ks[9], (C2,), 0.1),
        "bn2_mean": rnd(ks[10], (C2,), 0.1),
        "bn2_var": 1.0 + 0.1 * jax.nn.sigmoid(rnd(ks[11], (C2,), 1.0)),
        "fc1_w": rnd(ks[12], (H1, C2 * L), 0.03),
        "fc1_b": rnd(ks[13], (H1,), 0.05),
        "fc2_w": rnd(ks[14], (num_classes, H1), 0.05),
        "fc2_b": rnd(ks[15], (num_classes,), 0.05),
    }


def archi_reference(x, p):
    """Pure-JAX reference replicating torch eval-mode forward (NCL layout)."""
    def conv1d(h, w, b):
        out = lax.conv_general_dilated(h, w, (1,), [(1, 1)],
                                       dimension_numbers=("NCH", "OIH", "NCH"))
        return out + b[None, :, None]

    def bn(h, prefix):
        scale = p[prefix + "_gamma"] / jnp.sqrt(p[prefix + "_var"] + BN_EPS)
        shift = p[prefix + "_beta"] - p[prefix + "_mean"] * scale
        return h * scale[None, :, None] + shift[None, :, None]

    h = jax.nn.relu(bn(conv1d(x, p["conv1_w"], p["conv1_b"]), "bn1"))
    h = jax.nn.relu(bn(conv1d(h, p["conv2_w"], p["conv2_b"]), "bn2"))
    h = h.reshape(h.shape[0], -1)                     # torch Flatten order: c*L + l
    h = jax.nn.relu(h @ p["fc1_w"].T + p["fc1_b"])
    return h @ p["fc2_w"].T + p["fc2_b"]


if __name__ == "__main__":
    key = jax.random.PRNGKey(0)
    k_params, k_x = jax.random.split(key)
    params = init_params(k_params)
    x = jax.random.normal(k_x, (4, C_IN, L), jnp.float32)   # PyTorch NCL input

    out = jax.block_until_ready(archi_forward(x, params))
    ref = jax.block_until_ready(archi_reference(x, params))

    assert out.shape == (4, NUM_CLASSES)
    assert jnp.allclose(out, ref, atol=2e-2, rtol=2e-2), float(jnp.max(jnp.abs(out - ref)))
    print("KERNEL_OK")
</pallas_src>

<mosaic_0001>
module attributes {stable_mosaic.version = 11 : i64} {
  func.func @archi_kernel(%arg0: i32, %arg1: memref<8x38xf32, #tpu.memory_space<vmem>>, %arg2: memref<38x304xf32, #tpu.memory_space<vmem>>, %arg3: memref<1x304xf32, #tpu.memory_space<vmem>>, %arg4: memref<304x1088xbf16, #tpu.memory_space<vmem>>, %arg5: memref<1x1088xf32, #tpu.memory_space<vmem>>, %arg6: memref<1088x272xbf16, #tpu.memory_space<vmem>>, %arg7: memref<1x272xf32, #tpu.memory_space<vmem>>, %arg8: memref<272x128xf32, #tpu.memory_space<vmem>>, %arg9: memref<1x128xf32, #tpu.memory_space<vmem>>, %arg10: memref<8x128xf32, #tpu.memory_space<vmem>>) attributes {dimension_semantics = [#tpu.dimension_semantics<parallel>], iteration_bounds = array<i64: 1>, scalar_prefetch = 0 : i64, scratch_operands = 0 : i64, tpu.core_type = #tpu.core_type<tc>, window_params = [{transform_indices = @transform_0, window_bounds = array<i64: 8, 38>}, {pipeline_mode = #tpu.pipeline_mode<synchronous>, transform_indices = @transform_1, window_bounds = array<i64: 38, 304>}, {pipeline_mode = #tpu.pipeline_mode<synchronous>, transform_indices = @transform_2, window_bounds = array<i64: 1, 304>}, {pipeline_mode = #tpu.pipeline_mode<synchronous>, transform_indices = @transform_3, window_bounds = array<i64: 304, 1088>}, {pipeline_mode = #tpu.pipeline_mode<synchronous>, transform_indices = @transform_4, window_bounds = array<i64: 1, 1088>}, {pipeline_mode = #tpu.pipeline_mode<synchronous>, transform_indices = @transform_5, window_bounds = array<i64: 1088, 272>}, {pipeline_mode = #tpu.pipeline_mode<synchronous>, transform_indices = @transform_6, window_bounds = array<i64: 1, 272>}, {pipeline_mode = #tpu.pipeline_mode<synchronous>, transform_indices = @transform_7, window_bounds = array<i64: 272, 128>}, {pipeline_mode = #tpu.pipeline_mode<synchronous>, transform_indices = @transform_8, window_bounds = array<i64: 1, 128>}, {transform_indices = @transform_9, window_bounds = array<i64: 8, 128>}]} {
    %c0 = arith.constant 0 : index
    %c0_0 = arith.constant 0 : index
    %0 = vector.load %arg1[%c0, %c0_0] : memref<8x38xf32, #tpu.memory_space<vmem>>, vector<8x38xf32>
    %c0_1 = arith.constant 0 : index
    %c0_2 = arith.constant 0 : index
    %1 = vector.load %arg2[%c0_1, %c0_2] : memref<38x304xf32, #tpu.memory_space<vmem>>, vector<38x304xf32>
    %cst = arith.constant dense<0.000000e+00> : vector<8x304xf32>
    %2 = tpu.matmul %0, %1, %cst {dimension_numbers = #tpu.dot_dimension_numbers<[1], [0], [0], [1], [0, 0, 1, 1], [], []>} : vector<8x38xf32>, vector<38x304xf32>, vector<8x304xf32> -> vector<8x304xf32>
    %c0_3 = arith.constant 0 : index
    %c0_4 = arith.constant 0 : index
    %3 = vector.load %arg3[%c0_3, %c0_4] : memref<1x304xf32, #tpu.memory_space<vmem>>, vector<1x304xf32>
    %4 = vector.broadcast %3 : vector<1x304xf32> to vector<8x304xf32>
    %5 = arith.addf %2, %4 : vector<8x304xf32>
    %cst_5 = arith.constant 0.000000e+00 : f32
    %6 = vector.broadcast %cst_5 : f32 to vector<8x304xf32>
    %7 = arith.maximumf %5, %6 : vector<8x304xf32>
    %8 = arith.truncf %7 : vector<8x304xf32> to vector<8x304xbf16>
    %c0_6 = arith.constant 0 : index
    %c0_7 = arith.constant 0 : index
    %9 = vector.load %arg4[%c0_6, %c0_7] : memref<304x1088xbf16, #tpu.memory_space<vmem>>, vector<304x1088xbf16>
    %cst_8 = arith.constant dense<0.000000e+00> : vector<8x1088xf32>
    %10 = tpu.matmul %8, %9, %cst_8 {dimension_numbers = #tpu.dot_dimension_numbers<[1], [0], [0], [1], [0, 0, 1, 1], [], []>} : vector<8x304xbf16>, vector<304x1088xbf16>, vector<8x1088xf32> -> vector<8x1088xf32>
    %c0_9 = arith.constant 0 : index
    %c0_10 = arith.constant 0 : index
    %11 = vector.load %arg5[%c0_9, %c0_10] : memref<1x1088xf32, #tpu.memory_space<vmem>>, vector<1x1088xf32>
    %12 = vector.broadcast %11 : vector<1x1088xf32> to vector<8x1088xf32>
    %13 = arith.addf %10, %12 : vector<8x1088xf32>
    %cst_11 = arith.constant 0.000000e+00 : f32
    %14 = vector.broadcast %cst_11 : f32 to vector<8x1088xf32>
    %15 = arith.maximumf %13, %14 : vector<8x1088xf32>
    %16 = arith.truncf %15 : vector<8x1088xf32> to vector<8x1088xbf16>
    %c0_12 = arith.constant 0 : index
    %c0_13 = arith.constant 0 : index
    %17 = vector.load %arg6[%c0_12, %c0_13] : memref<1088x272xbf16, #tpu.memory_space<vmem>>, vector<1088x272xbf16>
    %cst_14 = arith.constant dense<0.000000e+00> : vector<8x272xf32>
    %18 = tpu.matmul %16, %17, %cst_14 {dimension_numbers = #tpu.dot_dimension_numbers<[1], [0], [0], [1], [0, 0, 1, 1], [], []>} : vector<8x1088xbf16>, vector<1088x272xbf16>, vector<8x272xf32> -> vector<8x272xf32>
    %c0_15 = arith.constant 0 : index
    %c0_16 = arith.constant 0 : index
    %19 = vector.load %arg7[%c0_15, %c0_16] : memref<1x272xf32, #tpu.memory_space<vmem>>, vector<1x272xf32>
    %20 = vector.broadcast %19 : vector<1x272xf32> to vector<8x272xf32>
    %21 = arith.addf %18, %20 : vector<8x272xf32>
    %cst_17 = arith.constant 0.000000e+00 : f32
    %22 = vector.broadcast %cst_17 : f32 to vector<8x272xf32>
    %23 = arith.maximumf %21, %22 : vector<8x272xf32>
    %c0_18 = arith.constant 0 : index
    %c0_19 = arith.constant 0 : index
    %24 = vector.load %arg8[%c0_18, %c0_19] : memref<272x128xf32, #tpu.memory_space<vmem>>, vector<272x128xf32>
    %cst_20 = arith.constant dense<0.000000e+00> : vector<8x128xf32>
    %25 = tpu.matmul %23, %24, %cst_20 {dimension_numbers = #tpu.dot_dimension_numbers<[1], [0], [0], [1], [0, 0, 1, 1], [], []>} : vector<8x272xf32>, vector<272x128xf32>, vector<8x128xf32> -> vector<8x128xf32>
    %c0_21 = arith.constant 0 : index
    %c0_22 = arith.constant 0 : index
    %26 = vector.load %arg9[%c0_21, %c0_22] : memref<1x128xf32, #tpu.memory_space<vmem>>, vector<1x128xf32>
    %27 = vector.broadcast %26 : vector<1x128xf32> to vector<8x128xf32>
    %28 = arith.addf %25, %27 : vector<8x128xf32>
    %c0_23 = arith.constant 0 : index
    %c0_24 = arith.constant 0 : index
    %29 = vector.load %arg10[%c0_23, %c0_24] : memref<8x128xf32, #tpu.memory_space<vmem>>, vector<8x128xf32>
    tpu.vector_store %arg10[%c0_23, %c0_24], %28 {strides = array<i32>} : memref<8x128xf32, #tpu.memory_space<vmem>>, vector<8x128xf32>,
    return
  }
  func.func @transform_0(%arg0: i32) -> (i32, i32) {
    %c0_i32 = arith.constant 0 : i32
    %c0_i32_0 = arith.constant 0 : i32
    return %arg0, %c0_i32 : i32, i32
  }
  func.func @transform_1(%arg0: i32) -> (i32, i32) {
    %c0_i32 = arith.constant 0 : i32
    %c0_i32_0 = arith.constant 0 : i32
    %c0_i32_1 = arith.constant 0 : i32
    return %c0_i32, %c0_i32_0 : i32, i32
  }
  func.func @transform_2(%arg0: i32) -> (i32, i32) {
    %c0_i32 = arith.constant 0 : i32
    %c0_i32_0 = arith.constant 0 : i32
    %c0_i32_1 = arith.constant 0 : i32
    return %c0_i32, %c0_i32_0 : i32, i32
  }
  func.func @transform_3(%arg0: i32) -> (i32, i32) {
    %c0_i32 = arith.constant 0 : i32
    %c0_i32_0 = arith.constant 0 : i32
    %c0_i32_1 = arith.constant 0 : i32
    return %c0_i32, %c0_i32_0 : i32, i32
  }
  func.func @transform_4(%arg0: i32) -> (i32, i32) {
    %c0_i32 = arith.constant 0 : i32
    %c0_i32_0 = arith.constant 0 : i32
    %c0_i32_1 = arith.constant 0 : i32
    return %c0_i32, %c0_i32_0 : i32, i32
  }
  func.func @transform_5(%arg0: i32) -> (i32, i32) {
    %c0_i32 = arith.constant 0 : i32
    %c0_i32_0 = arith.constant 0 : i32
    %c0_i32_1 = arith.constant 0 : i32
    return %c0_i32, %c0_i32_0 : i32, i32
  }
  func.func @transform_6(%arg0: i32) -> (i32, i32) {
    %c0_i32 = arith.constant 0 : i32
    %c0_i32_0 = arith.constant 0 : i32
    %c0_i32_1 = arith.constant 0 : i32
    return %c0_i32, %c0_i32_0 : i32, i32
  }
  func.func @transform_7(%arg0: i32) -> (i32, i32) {
    %c0_i32 = arith.constant 0 : i32
    %c0_i32_0 = arith.constant 0 : i32
    %c0_i32_1 = arith.constant 0 : i32
    return %c0_i32, %c0_i32_0 : i32, i32
  }
  func.func @transform_8(%arg0: i32) -> (i32, i32) {
    %c0_i32 = arith.constant 0 : i32
    %c0_i32_0 = arith.constant 0 : i32
    %c0_i32_1 = arith.constant 0 : i32
    return %c0_i32, %c0_i32_0 : i32, i32
  }
  func.func @transform_9(%arg0: i32) -> (i32, i32) {
    %c0_i32 = arith.constant 0 : i32
    %c0_i32_0 = arith.constant 0 : i32
    return %arg0, %c0_i32 : i32, i32
  }
}

</mosaic_0001>

<bundles_post_ra>
// kernel: tpu_custom_call.1
= control target key start
LH: loop header
LB: loop body
LE: loop exit
PB: predicated region body
PF: predicated region fallthrough
CT: control target
= control target key end

     0   :  { %vm71_vm0 = vcmask 1045504   ;;  %v4900_v5 = vmov 0.0   ;;  %vm67_vm1 = vcmask 310272   ;;  %vm4901_vm2 = vmmov 0   ;;  %s6397_s0 = inlined_call_operand.vmem [shape: f32[8,38], index: 0, kind: input, shape index: {}]   ;;  %s6398_s1 = inlined_call_operand.vmem [shape: f32[38,304], index: 1, kind: input, shape index: {}]   ;;  %s6399_s2 = inlined_call_operand.vmem [shape: f32[1,304], index: 2, kind: input, shape index: {}]   ;;  %s6400_s3 = inlined_call_operand.vmem [shape: bf16[304,1088], index: 3, kind: input, shape index: {}]   ;;  %s6401_s4 = inlined_call_operand.vmem [shape: f32[1,1088], index: 4, kind: input, shape index: {}]   ;;  %s6402_s5 = inlined_call_operand.vmem [shape: bf16[1088,272], index: 5, kind: input, shape index: {}]   ;;  %s6403_s6 = inlined_call_operand.vmem [shape: f32[1,272], index: 6, kind: input, shape index: {}]   ;;  %s6404_s7 = inlined_call_operand.vmem [shape: f32[272,128], index: 7, kind: input, shape index: {}]   ;;  %s6405_s8 = inlined_call_operand.vmem [shape: f32[1,128], index: 8, kind: input, shape index: {}]   ;;  %s6406_s9 = inlined_call_operand.hbm [shape: f32[8,128], index: 9, kind: output, shape index: {}]  }
   0x1   :  { %v48_v0 = vld [vmem:[%s6398_s1 + $0x68] sm:$0x3f]  ;;  %v47_v1 = vld [vmem:[%s6398_s1 + $0x60] sm:$0x3f]  ;;  %v45_v2 = vld [vmem:[%s6398_s1 + $0x50] sm:$0xff]  ;;  %145 = vmatprep.mubr.f32.mxu1 %v4900_v5  ;;  %v4902_v57 = vmov 0   ;;  %v52_v58 = vlaneseq }
   0x2   :  { %3760 = vmatprep.subr.msk.mxu1 %vm71_vm0, %v48_v0  ;;  %v44_v3 = vld [vmem:[%s6398_s1 + $0x48] sm:$0xff]  ;;  %v42_v4 = vld [vmem:[%s6398_s1 + $0x38] sm:$0xff]  ;;  %v41_v6 = vld [vmem:[%s6398_s1 + $0x30] sm:$0xff] }
   0x3   :  { %3761 = vmatpush1.msk.msra.mxu1 %vm71_vm0, %v47_v1  ;;  %v39_v7 = vld [vmem:[%s6398_s1 + $0x20] sm:$0xff]  ;;  %v38_v8 = vld [vmem:[%s6398_s1 + $0x18] sm:$0xff]  ;;  %v36_v9 = vld [vmem:[%s6398_s1 + $0x8] sm:$0xff]  ;;  %v5136_v59 = vshrl.u32 %v52_v58, 7 }
   0x4   :  { %105 = vmatprep.subr.mxu1 %v45_v2  ;;  %v35_v10 = vld [vmem:[%s6398_s1] sm:$0xff]  ;;  %v4361_v12 = vld [vmem:[%s6400_s3 + $0x1f8] ss:$36 sps:$4 sm:$0xff]   ;;  %v49_v15 = vld [vmem:[%s6398_s1 + $0x70] sm:$0x3f] }
   0x5   :  { %106 = vmatpush1.msra.mxu1 %v44_v3  ;;  %v4359_v11 = vld [vmem:[%s6400_s3 + $0x1fc] ss:$36 sps:$4 sm:$0xff]   ;;  %v4362_v14 = vld [vmem:[%s6400_s3 + $0x1b4] ss:$36 sps:$4 sm:$0xff]   ;;  %v4365_v17 = vld [vmem:[%s6400_s3 + $0x16c] ss:$36 sps:$4 sm:$0xff]  }
   0x6   :  { %107 = vmatprep.subr.mxu1 %v42_v4  ;;  %v34_v13 = vld [vmem:[%s6397_s0] sm:$0xff]  ;;  %1345 = vmatprep.subr.bf16.mxu0 %v4359_v11  ;;  %v4364_v16 = vld [vmem:[%s6400_s3 + $0x1b0] ss:$36 sps:$4 sm:$0xff]   ;;  %v46_v18 = vld [vmem:[%s6398_s1 + $0x58] sm:$0xff]  ;;  %v5139_v60 = vsub.s32 0, %v5136_v59  ;;  %v5145_v62 = vsub.s32 1, %v5136_v59 }
   0x7   :  { %108 = vmatpush1.msra.mxu1 %v41_v6  ;;  %1346 = vmatpush1.bf16.msra.mxu0 %v4361_v12  ;;  %v43_v19 = vld [vmem:[%s6398_s1 + $0x40] sm:$0xff]  ;;  %v4367_v20 = vld [vmem:[%s6400_s3 + $0x168] ss:$36 sps:$4 sm:$0xff]   ;;  %v37_v23 = vld [vmem:[%s6398_s1 + $0x10] sm:$0xff] }
   0x8   :  { %109 = vmatprep.subr.mxu1 %v39_v7  ;;  %1347 = vmatprep.subr.bf16.mxu0 %v4362_v14  ;;  %v4368_v21 = vld [vmem:[%s6400_s3 + $0x124] ss:$36 sps:$4 sm:$0xff]   ;;  %v4371_v25 = vld [vmem:[%s6400_s3 + $0xdc] ss:$36 sps:$4 sm:$0xff]   ;;  %v4374_v27 = vld [vmem:[%s6400_s3 + $0x94] ss:$36 sps:$4 sm:$0xff]  }
   0x9   :  { %110 = vmatpush1.msra.mxu1 %v38_v8  ;;  %v40_v22 = vld [vmem:[%s6398_s1 + $0x28] sm:$0xff]  ;;  %v4370_v24 = vld [vmem:[%s6400_s3 + $0x120] ss:$36 sps:$4 sm:$0xff]   ;;  %v4373_v26 = vld [vmem:[%s6400_s3 + $0xd8] ss:$36 sps:$4 sm:$0xff]   ;;  %v5150_v7 = vsub.s32 2, %v5136_v59 }
   0xa   :  { %111 = vmatprep.subr.mxu1 %v36_v9  ;;  %v4376_v28 = vld [vmem:[%s6400_s3 + $0x90] ss:$36 sps:$4 sm:$0xff]   ;;  %v4379_v30 = vld [vmem:[%s6400_s3 + $0x48] ss:$36 sps:$4 sm:$0xff]   ;;  %v4382_v32 = vld [vmem:[%s6400_s3] ss:$36 sps:$4 sm:$0xff]  }
   0xb   :  { %112 = vmatpush1.msra.mxu1 %v35_v10  ;;  %1348 = vmatpush1.bf16.msra.mxu0 %v4364_v16  ;;  %v4377_v29 = vld [vmem:[%s6400_s3 + $0x4c] ss:$36 sps:$4 sm:$0xff]   ;;  %v4380_v31 = vld [vmem:[%s6400_s3 + $0x4] ss:$36 sps:$4 sm:$0xff]   ;;  %v4383_v33 = vld [vmem:[%s6400_s3 + $0x43c] ss:$36 sps:$4 sm:$0xff]  }
   0xc   :  { %3762 = vmatmul.mubr.msk.f32.vlgmr.msra.gmra.mxu1 %vm67_vm1, %v34_v13  ;;  %4313 = vmatprep.subr.mxu1 %v4900_v5  ;;  %v4385_v34 = vld [vmem:[%s6400_s3 + $0x438] ss:$36 sps:$4 sm:$0xff]   ;;  %v4388_v36 = vld [vmem:[%s6400_s3 + $0x3f0] ss:$36 sps:$4 sm:$0xff]   ;;  %v4391_v38 = vld [vmem:[%s6400_s3 + $0x3a8] ss:$36 sps:$4 sm:$0xff]  }
   0xd   :  { %4314 = vmatpush3.msk.msra.mxu1 %vm71_vm0, %v49_v15  ;;  %4323 = vmatprep.mubr.msk.f32.mxu1 %vm4901_vm2, %v4900_v5  ;;  %v4386_v35 = vld [vmem:[%s6400_s3 + $0x3f4] ss:$36 sps:$4 sm:$0xff]   ;;  %v4389_v37 = vld [vmem:[%s6400_s3 + $0x3ac] ss:$36 sps:$4 sm:$0xff]   ;;  %v4392_v39 = vld [vmem:[%s6400_s3 + $0x364] ss:$36 sps:$4 sm:$0xff]  }
   0xe   :  { %4315 = vmatprep.subr.mxu1 %v4900_v5  ;;  %1349 = vmatprep.subr.bf16.mxu0 %v4365_v17  ;;  %v4394_v40 = vld [vmem:[%s6400_s3 + $0x360] ss:$36 sps:$4 sm:$0xff]   ;;  %v4397_v42 = vld [vmem:[%s6400_s3 + $0x318] ss:$36 sps:$4 sm:$0xff]   ;;  %v4400_v44 = vld [vmem:[%s6400_s3 + $0x2d0] ss:$36 sps:$4 sm:$0xff]  }
   0xf   :  { %4316 = vmatpush3.msra.mxu1 %v46_v18  ;;  %1350 = vmatpush1.bf16.msra.mxu0 %v4367_v20  ;;  %v4395_v41 = vld [vmem:[%s6400_s3 + $0x31c] ss:$36 sps:$4 sm:$0xff]   ;;  %v4398_v43 = vld [vmem:[%s6400_s3 + $0x2d4] ss:$36 sps:$4 sm:$0xff]   ;;  %v4401_v45 = vld [vmem:[%s6400_s3 + $0x28c] ss:$36 sps:$4 sm:$0xff]  }
  0x10   :  { %4317 = vmatprep.subr.mxu1 %v4900_v5  ;;  %1351 = vmatprep.subr.bf16.mxu0 %v4368_v21  ;;  %v4403_v46 = vld [vmem:[%s6400_s3 + $0x288] ss:$36 sps:$4 sm:$0xff]   ;;  %v4406_v47 = vld [vmem:[%s6400_s3 + $0x514] ss:$36 sps:$4 sm:$0xff]   ;;  %v4409_v50 = vld [vmem:[%s6400_s3 + $0x240] ss:$36 sps:$4 sm:$0xff]  }
  0x11   :  { %4318 = vmatpush3.msra.mxu1 %v43_v19  ;;  %v4404_v48 = vld [vmem:[%s6400_s3 + $0x510] ss:$36 sps:$4 sm:$0xff]   ;;  %v4407_v49 = vld [vmem:[%s6400_s3 + $0x244] ss:$36 sps:$4 sm:$0xff]   ;;  %v4415_v53 = vld [vmem:[%s6400_s3 + $0x51c] ss:$36 sps:$4 sm:$0xff]  }
  0x12   :  { %4319 = vmatprep.subr.mxu1 %v4900_v5  ;;  %v4412_v51 = vld [vmem:[%s6400_s3 + $0x4cc] ss:$36 sps:$4 sm:$0xff]   ;;  %v4418_v54 = vld [vmem:[%s6400_s3 + $0x484] ss:$36 sps:$4 sm:$0xff]   ;;  %v50_v61 = vld [vmem:[%s6399_s2] sm:$0x7] }
  0x13   :  { %4320 = vmatpush3.msra.mxu1 %v40_v22  ;;  %1352 = vmatpush1.bf16.msra.mxu0 %v4370_v24  ;;  %v4410_v52 = vld [vmem:[%s6400_s3 + $0x4c8] ss:$36 sps:$4 sm:$0xff]   ;;  %v4416_v55 = vld [vmem:[%s6400_s3 + $0x480] ss:$36 sps:$4 sm:$0xff]   ;;  %v55_v63 = vrot.slane %v50_v61, %v5139_v60  ;;  %v59_v0 = vrot.slane %v50_v61, %v5145_v62  ;;  %v4413_v9 = vld [vmem:[%s6400_s3 + $0x518] ss:$36 sps:$4 sm:$0xff]   ;;  %v63_v12 = vrot.slane %v50_v61, %v5150_v7 }
  0x14   :  { %4321 = vmatprep.subr.mxu1 %v4900_v5  ;;  %1353 = vmatprep.subr.bf16.mxu0 %v4371_v25  ;;  %v4424_v56 = vld [vmem:[%s6400_s3 + $0x204] ss:$36 sps:$4 sm:$0xff]   ;;  %v4421_v10 = vld [vmem:[%s6400_s3 + $0x4d4] ss:$36 sps:$4 sm:$0xff]  }
  0x15   :  { %4322 = vmatpush3.msra.mxu1 %v37_v23  ;;  %v4419_v15 = vld [vmem:[%s6400_s3 + $0x4d0] ss:$36 sps:$4 sm:$0xff]  }
  0x16   :  { %4324 = vmatmul.mubr.msk.f32.vlgmr.msra.gmra.mxu1 %vm67_vm1, %v34_v13  ;;  %1396 = vmatprep.subr.bf16.mxu1 %v4406_v47 }
  0x17   :  { %1354 = vmatpush1.bf16.msra.mxu0 %v4373_v26  ;;  %1397 = vmatpush1.bf16.msra.mxu1 %v4404_v48 }
  0x18   :  { %1355 = vmatprep.subr.bf16.mxu0 %v4374_v27  ;;  %1398 = vmatprep.subr.bf16.mxu1 %v4412_v51 }
  0x19   :  { %1418 = vmatprep.mubr.bf16.mxu1 %v4902_v57 }
  0x1b   :  { %1356 = vmatpush1.bf16.msra.mxu0 %v4376_v28  ;;  %1399 = vmatpush1.bf16.msra.mxu1 %v4410_v52 }
  0x1c   :  { %1357 = vmatprep.subr.bf16.mxu0 %v4377_v29  ;;  %1400 = vmatprep.subr.bf16.mxu1 %v4418_v54 }
  0x1f   :  { %1358 = vmatpush1.bf16.msra.mxu0 %v4379_v30  ;;  %1401 = vmatpush1.bf16.msra.mxu1 %v4416_v55 }
  0x20   :  { %1359 = vmatprep.subr.bf16.mxu0 %v4380_v31  ;;  %1427 = vmatprep.subr.bf16.mxu1 %v4424_v56 }
  0x23   :  { %1360 = vmatpush1.bf16.msra.mxu0 %v4382_v32 }
  0x24   :  { %1361 = vmatprep.subr.bf16.mxu0 %v4383_v33 }
  0x27   :  { %1362 = vmatpush2.bf16.msra.mxu0 %v4385_v34 }
  0x28   :  { %1363 = vmatprep.subr.bf16.mxu0 %v4386_v35 }
  0x2b   :  { %1364 = vmatpush2.bf16.msra.mxu0 %v4388_v36 }
  0x2c   :  { %1365 = vmatprep.subr.bf16.mxu0 %v4389_v37 }
  0x2f   :  { %1366 = vmatpush2.bf16.msra.mxu0 %v4391_v38 }
  0x30   :  { %1367 = vmatprep.subr.bf16.mxu0 %v4392_v39 }
  0x33   :  { %1368 = vmatpush2.bf16.msra.mxu0 %v4394_v40 }
  0x34   :  { %1369 = vmatprep.subr.bf16.mxu0 %v4395_v41 }
  0x37   :  { %1370 = vmatpush2.bf16.msra.mxu0 %v4397_v42 }
  0x38   :  { %1371 = vmatprep.subr.bf16.mxu0 %v4398_v43 }
  0x3b   :  { %1372 = vmatpush2.bf16.msra.mxu0 %v4400_v44 }
  0x3c   :  { %1373 = vmatprep.subr.bf16.mxu0 %v4401_v45 }
  0x3f   :  { %1374 = vmatpush2.bf16.msra.mxu0 %v4403_v46 }
  0x40   :  { %1375 = vmatprep.subr.bf16.mxu0 %v4407_v49 }
  0x43   :  { %1376 = vmatpush2.bf16.msra.mxu0 %v4409_v50 }
  0x44   :  { %1478 = vmatprep.subr.bf16.mxu0 %v4415_v53 }
  0xcc   :  { %v147_v1 = vpop.f32.mrf.mxu1 }
  0xcd   :  { %v148_v2 = vadd.f32 %v147_v1, %v55_v63 }
  0xce   :  { %v149_v3 = vpop.f32.mrf.mxu1 }
  0xcf   :  { %v222_v4 = vmax.f32 %v148_v2, 0.0  ;;  %v150_v6 = vadd.f32 %v149_v3, %v59_v0 }
  0xd1   :  { %v223_v8 = vmax.f32 %v150_v6, 0.0  ;;  %v5161_v13 = vpack.c.bf16 %v222_v4, %v222_v4 }
  0xd3   :  { %v5158_v11 = vpack.c.bf16 %v223_v8, %v223_v8 }
  0xd5   :  { %1377 = vmatprep.mubr.bf16.mxu0 %v5158_v11 }
  0xd6   :  { %v218_v14 = vpop.f32.mrf.mxu1  ;;  %1378 = vmatmul.mubr.bf16.vlgmr.msra.gmra.mxu0 %v5161_v13 }
  0xd7   :  { %v219_v16 = vadd.f32 %v218_v14, %v63_v12  ;;  %1479 = vmatpush1.bf16.msra.mxu0 %v4413_v9  ;;  %1500 = vmatprep.mubr.bf16.mxu0 %v4902_v57 }
  0xd8   :  { %14 = vsyncpa [#allocation3], 0  ;;  %v4325_v17 = vpop.f32.mrf.mxu1  ;;  %1480 = vmatprep.subr.bf16.mxu0 %v4421_v10  ;;  %v4427_v18 = vld [vmem:[%s6400_s3 + $0x48c] ss:$36 sps:$4 sm:$0xff]   ;;  %v4422_v20 = vld [vmem:[%s6400_s3 + $0x200] ss:$36 sps:$4 sm:$0xff]  }
  0xd9   :  { %v224_v19 = vmax.f32 %v219_v16, 0.0  ;;  %vm1341_vm3 = vcmask 392192   ;;  %v4425_v22 = vld [vmem:[%s6400_s3 + $0x488] ss:$36 sps:$4 sm:$0xff]   ;;  %v4430_v23 = vld [vmem:[%s6400_s3 + $0x1bc] ss:$36 sps:$4 sm:$0xff]  }
  0xda   :  { %v4433_v24 = vld [vmem:[%s6400_s3 + $0x20c] ss:$36 sps:$4 sm:$0xff]   ;;  %v4428_v25 = vld [vmem:[%s6400_s3 + $0x1b8] ss:$36 sps:$4 sm:$0xff]   ;;  %v4439_v28 = vld [vmem:[%s6400_s3 + $0x1c4] ss:$36 sps:$4 sm:$0xff]  }
  0xdb   :  { %v5175_v21 = vpack.c.bf16 %v224_v19, %v224_v19  ;;  %1481 = vmatpush1.bf16.msra.mxu0 %v4419_v15  ;;  %v4431_v26 = vld [vmem:[%s6400_s3 + $0x208] ss:$36 sps:$4 sm:$0xff]   ;;  %v4436_v27 = vld [vmem:[%s6400_s3 + $0x174] ss:$36 sps:$4 sm:$0xff]   ;;  %v4437_v30 = vld [vmem:[%s6400_s3 + $0x1c0] ss:$36 sps:$4 sm:$0xff]  }
  0xdc   :  { %1482 = vmatprep.subr.bf16.mxu0 %v4427_v18  ;;  %v4434_v29 = vld [vmem:[%s6400_s3 + $0x170] ss:$36 sps:$4 sm:$0xff]   ;;  %v4445_v32 = vld [vmem:[%s6400_s3 + $0x17c] ss:$36 sps:$4 sm:$0xff]   ;;  %v4440_v33 = vld [vmem:[%s6400_s3 + $0x128] ss:$36 sps:$4 sm:$0xff]  }
  0xdd   :  { %3937 = vmatmul.mubr.msk.bf16.vlgmr.msra.gmra.mxu1 %vm1341_vm3, %v5175_v21  ;;  %v4442_v31 = vld [vmem:[%s6400_s3 + $0x12c] ss:$36 sps:$4 sm:$0xff]   ;;  %v4443_v34 = vld [vmem:[%s6400_s3 + $0x178] ss:$36 sps:$4 sm:$0xff]   ;;  %v4448_v35 = vld [vmem:[%s6400_s3 + $0xe4] ss:$36 sps:$4 sm:$0xff]  }
  0xde   :  { %1428 = vmatpush1.bf16.msra.mxu1 %v4422_v20  ;;  %1459 = vmatprep.mubr.bf16.mxu1 %v5158_v11  ;;  %v4451_v36 = vld [vmem:[%s6400_s3 + $0x134] ss:$36 sps:$4 sm:$0xff]   ;;  %v4446_v37 = vld [vmem:[%s6400_s3 + $0xe0] ss:$36 sps:$4 sm:$0xff]   ;;  %v4457_v40 = vld [vmem:[%s6400_s3 + $0xec] ss:$36 sps:$4 sm:$0xff]  }
  0xdf   :  { %1483 = vmatpush1.bf16.msra.mxu0 %v4425_v22  ;;  %1429 = vmatprep.subr.bf16.mxu1 %v4430_v23  ;;  %v4449_v38 = vld [vmem:[%s6400_s3 + $0x130] ss:$36 sps:$4 sm:$0xff]   ;;  %v4454_v39 = vld [vmem:[%s6400_s3 + $0x9c] ss:$36 sps:$4 sm:$0xff]   ;;  %v4455_v42 = vld [vmem:[%s6400_s3 + $0xe8] ss:$36 sps:$4 sm:$0xff]  }
  0xe0   :  { %1509 = vmatprep.subr.bf16.mxu0 %v4433_v24  ;;  %v4452_v41 = vld [vmem:[%s6400_s3 + $0x98] ss:$36 sps:$4 sm:$0xff]   ;;  %v4463_v44 = vld [vmem:[%s6400_s3 + $0xa4] ss:$36 sps:$4 sm:$0xff]   ;;  %v4458_v45 = vld [vmem:[%s6400_s3 + $0x50] ss:$36 sps:$4 sm:$0xff]  }
  0xe1   :  { %v4460_v43 = vld [vmem:[%s6400_s3 + $0x54] ss:$36 sps:$4 sm:$0xff]   ;;  %v4461_v46 = vld [vmem:[%s6400_s3 + $0xa0] ss:$36 sps:$4 sm:$0xff]   ;;  %v4466_v47 = vld [vmem:[%s6400_s3 + $0xc] ss:$36 sps:$4 sm:$0xff]  }
  0xe2   :  { %1430 = vmatpush1.bf16.msra.mxu1 %v4428_v25  ;;  %3938 = vmatmul.mubr.msk.bf16.vlgmr.msra.gmra.mxu0 %vm1341_vm3, %v5175_v21  ;;  %v4469_v48 = vld [vmem:[%s6400_s3 + $0x5c] ss:$36 sps:$4 sm:$0xff]   ;;  %v4464_v49 = vld [vmem:[%s6400_s3 + $0x8] ss:$36 sps:$4 sm:$0xff]   ;;  %v4475_v52 = vld [vmem:[%s6400_s3 + $0x14] ss:$36 sps:$4 sm:$0xff]  }
  0xe3   :  { %1510 = vmatpush1.bf16.msra.mxu0 %v4431_v26  ;;  %1541 = vmatprep.mubr.bf16.mxu0 %v5158_v11  ;;  %v4467_v50 = vld [vmem:[%s6400_s3 + $0x58] ss:$36 sps:$4 sm:$0xff]   ;;  %v4472_v51 = vld [vmem:[%s6400_s3 + $0x444] ss:$36 sps:$4 sm:$0xff]   ;;  %v4473_v54 = vld [vmem:[%s6400_s3 + $0x10] ss:$36 sps:$4 sm:$0xff]  }
  0xe4   :  { %1431 = vmatprep.subr.bf16.mxu1 %v4436_v27  ;;  %1511 = vmatprep.subr.bf16.mxu0 %v4439_v28  ;;  %v4470_v53 = vld [vmem:[%s6400_s3 + $0x440] ss:$36 sps:$4 sm:$0xff]   ;;  %v4481_v56 = vld [vmem:[%s6400_s3 + $0x44c] ss:$36 sps:$4 sm:$0xff]   ;;  %v4476_v58 = vld [vmem:[%s6400_s3 + $0x3f8] ss:$36 sps:$4 sm:$0xff]  }
  0xe5   :  { %v4478_v55 = vld [vmem:[%s6400_s3 + $0x3fc] ss:$36 sps:$4 sm:$0xff]   ;;  %v4479_v61 = vld [vmem:[%s6400_s3 + $0x448] ss:$36 sps:$4 sm:$0xff]   ;;  %v4484_v63 = vld [vmem:[%s6400_s3 + $0x3b4] ss:$36 sps:$4 sm:$0xff]  }
  0xe6   :  { %1432 = vmatpush1.bf16.msra.mxu1 %v4434_v29  ;;  %v4487_v0 = vld [vmem:[%s6400_s3 + $0x404] ss:$36 sps:$4 sm:$0xff]   ;;  %v4482_v1 = vld [vmem:[%s6400_s3 + $0x3b0] ss:$36 sps:$4 sm:$0xff]   ;;  %v4493_v4 = vld [vmem:[%s6400_s3 + $0x3bc] ss:$36 sps:$4 sm:$0xff]  }
  0xe7   :  { %1512 = vmatpush1.bf16.msra.mxu0 %v4437_v30  ;;  %1433 = vmatprep.subr.bf16.mxu1 %v4442_v31  ;;  %v4485_v2 = vld [vmem:[%s6400_s3 + $0x400] ss:$36 sps:$4 sm:$0xff]   ;;  %v4490_v3 = vld [vmem:[%s6400_s3 + $0x36c] ss:$36 sps:$4 sm:$0xff]   ;;  %v4491_v8 = vld [vmem:[%s6400_s3 + $0x3b8] ss:$36 sps:$4 sm:$0xff]  }
  0xe8   :  { %1513 = vmatprep.subr.bf16.mxu0 %v4445_v32  ;;  %v4488_v6 = vld [vmem:[%s6400_s3 + $0x368] ss:$36 sps:$4 sm:$0xff]   ;;  %v4499_v10 = vld [vmem:[%s6400_s3 + $0x374] ss:$36 sps:$4 sm:$0xff]   ;;  %v4494_v12 = vld [vmem:[%s6400_s3 + $0x320] ss:$36 sps:$4 sm:$0xff]  }
  0xe9   :  { %v4496_v9 = vld [vmem:[%s6400_s3 + $0x324] ss:$36 sps:$4 sm:$0xff]   ;;  %v4497_v14 = vld [vmem:[%s6400_s3 + $0x370] ss:$36 sps:$4 sm:$0xff]   ;;  %v4502_v15 = vld [vmem:[%s6400_s3 + $0x2dc] ss:$36 sps:$4 sm:$0xff]  }
  0xea   :  { %1434 = vmatpush1.bf16.msra.mxu1 %v4440_v33  ;;  %v4505_v16 = vld [vmem:[%s6400_s3 + $0x32c] ss:$36 sps:$4 sm:$0xff]   ;;  %v4500_v17 = vld [vmem:[%s6400_s3 + $0x2d8] ss:$36 sps:$4 sm:$0xff]   ;;  %v4511_v20 = vld [vmem:[%s6400_s3 + $0x2e4] ss:$36 sps:$4 sm:$0xff]  }
  0xeb   :  { %1514 = vmatpush1.bf16.msra.mxu0 %v4443_v34  ;;  %1435 = vmatprep.subr.bf16.mxu1 %v4448_v35  ;;  %v4503_v18 = vld [vmem:[%s6400_s3 + $0x328] ss:$36 sps:$4 sm:$0xff]   ;;  %v4508_v19 = vld [vmem:[%s6400_s3 + $0x294] ss:$36 sps:$4 sm:$0xff]   ;;  %v4509_v23 = vld [vmem:[%s6400_s3 + $0x2e0] ss:$36 sps:$4 sm:$0xff]  }
  0xec   :  { %1515 = vmatprep.subr.bf16.mxu0 %v4451_v36  ;;  %v4506_v22 = vld [vmem:[%s6400_s3 + $0x290] ss:$36 sps:$4 sm:$0xff]   ;;  %v4517_v25 = vld [vmem:[%s6400_s3 + $0x29c] ss:$36 sps:$4 sm:$0xff]   ;;  %v4512_v26 = vld [vmem:[%s6400_s3 + $0x248] ss:$36 sps:$4 sm:$0xff]  }
  0xed   :  { %v4514_v24 = vld [vmem:[%s6400_s3 + $0x24c] ss:$36 sps:$4 sm:$0xff]   ;;  %v4515_v27 = vld [vmem:[%s6400_s3 + $0x298] ss:$36 sps:$4 sm:$0xff]   ;;  %v4520_v28 = vld [vmem:[%s6400_s3 + $0x524] ss:$36 sps:$4 sm:$0xff]  }
  0xee   :  { %1436 = vmatpush1.bf16.msra.mxu1 %v4446_v37  ;;  %v4523_v29 = vld [vmem:[%s6400_s3 + $0x254] ss:$36 sps:$4 sm:$0xff]   ;;  %v4518_v30 = vld [vmem:[%s6400_s3 + $0x520] ss:$36 sps:$4 sm:$0xff]   ;;  %v4529_v33 = vld [vmem:[%s6400_s3 + $0x52c] ss:$36 sps:$4 sm:$0xff]  }
  0xef   :  { %1516 = vmatpush1.bf16.msra.mxu0 %v4449_v38  ;;  %1437 = vmatprep.subr.bf16.mxu1 %v4454_v39  ;;  %v4521_v31 = vld [vmem:[%s6400_s3 + $0x250] ss:$36 sps:$4 sm:$0xff]   ;;  %v4526_v32 = vld [vmem:[%s6400_s3 + $0x4dc] ss:$36 sps:$4 sm:$0xff]   ;;  %v4527_v35 = vld [vmem:[%s6400_s3 + $0x528] ss:$36 sps:$4 sm:$0xff]  }
  0xf0   :  { %1517 = vmatprep.subr.bf16.mxu0 %v4457_v40  ;;  %v4524_v34 = vld [vmem:[%s6400_s3 + $0x4d8] ss:$36 sps:$4 sm:$0xff]   ;;  %v4535_v37 = vld [vmem:[%s6400_s3 + $0x4e4] ss:$36 sps:$4 sm:$0xff]   ;;  %v4530_v38 = vld [vmem:[%s6400_s3 + $0x490] ss:$36 sps:$4 sm:$0xff]  }
  0xf1   :  { %v4532_v36 = vld [vmem:[%s6400_s3 + $0x494] ss:$36 sps:$4 sm:$0xff]   ;;  %v4533_v39 = vld [vmem:[%s6400_s3 + $0x4e0] ss:$36 sps:$4 sm:$0xff]   ;;  %vm3148_vm4 = vcmask 523264   ;;  %vm3601_vm5 = vcmask 130048  }
  0xf2   :  { %1438 = vmatpush1.bf16.msra.mxu1 %v4452_v41  ;;  %v4538_v40 = vld [vmem:[%s6400_s3 + $0x214] ss:$36 sps:$4 sm:$0xff]   ;;  %v4541_v41 = vld [vmem:[%s6400_s3 + $0x49c] ss:$36 sps:$4 sm:$0xff]  }
  0xf3   :  { %1518 = vmatpush1.bf16.msra.mxu0 %v4455_v42  ;;  %1439 = vmatprep.subr.bf16.mxu1 %v4460_v43  ;;  %v4536_v42 = vld [vmem:[%s6400_s3 + $0x210] ss:$36 sps:$4 sm:$0xff]   ;;  %v4539_v43 = vld [vmem:[%s6400_s3 + $0x498] ss:$36 sps:$4 sm:$0xff]  }
  0xf4   :  { %1519 = vmatprep.subr.bf16.mxu0 %v4463_v44  ;;  %v4544_v44 = vld [vmem:[%s6400_s3 + $0x1cc] ss:$36 sps:$4 sm:$0xff]  }
  0xf6   :  { %1440 = vmatpush1.bf16.msra.mxu1 %v4458_v45  ;;  %v4545_v45 = vld [vmem:[%s6400_s3 + $0x458] ss:$36 sps:$4 sm:$0xff]  }
  0xf7   :  { %1520 = vmatpush1.bf16.msra.mxu0 %v4461_v46  ;;  %1441 = vmatprep.subr.bf16.mxu1 %v4466_v47  ;;  %v4542_v46 = vld [vmem:[%s6400_s3 + $0x1c8] ss:$36 sps:$4 sm:$0xff]   ;;  %v4546_v47 = vld [vmem:[%s6400_s3 + $0x218] ss:$36 sps:$4 sm:$0xff]  }
  0xf8   :  { %1521 = vmatprep.subr.bf16.mxu0 %v4469_v48  ;;  %v4549_v48 = vld [vmem:[%s6400_s3 + $0x184] ss:$36 sps:$4 sm:$0xff]  }
  0xfa   :  { %1442 = vmatpush1.bf16.msra.mxu1 %v4464_v49  ;;  %v4550_v49 = vld [vmem:[%s6400_s3 + $0x410] ss:$36 sps:$4 sm:$0xff]  }
  0xfb   :  { %1522 = vmatpush1.bf16.msra.mxu0 %v4467_v50  ;;  %1443 = vmatprep.subr.bf16.mxu1 %v4472_v51  ;;  %v4547_v50 = vld [vmem:[%s6400_s3 + $0x180] ss:$36 sps:$4 sm:$0xff]   ;;  %v4551_v51 = vld [vmem:[%s6400_s3 + $0x1d0] ss:$36 sps:$4 sm:$0xff]  }
  0xfc   :  { %1523 = vmatprep.subr.bf16.mxu0 %v4475_v52  ;;  %v4554_v52 = vld [vmem:[%s6400_s3 + $0x13c] ss:$36 sps:$4 sm:$0xff]  }
  0xfe   :  { %1444 = vmatpush2.bf16.msra.mxu1 %v4470_v53  ;;  %v4555_v53 = vld [vmem:[%s6400_s3 + $0x3c8] ss:$36 sps:$4 sm:$0xff]  }
  0xff   :  { %1524 = vmatpush1.bf16.msra.mxu0 %v4473_v54  ;;  %1445 = vmatprep.subr.bf16.mxu1 %v4478_v55  ;;  %v4552_v54 = vld [vmem:[%s6400_s3 + $0x138] ss:$36 sps:$4 sm:$0xff]  }
 0x100   :  { %1525 = vmatprep.subr.bf16.mxu0 %v4481_v56  ;;  %v4559_v55 = vld [vmem:[%s6400_s3 + $0xf4] ss:$36 sps:$4 sm:$0xff]   ;;  %v4560_v56 = vld [vmem:[%s6400_s3 + $0x380] ss:$36 sps:$4 sm:$0xff]  }
 0x102   :  { %1446 = vmatpush2.bf16.msra.mxu1 %v4476_v58  ;;  %v4557_v58 = vld [vmem:[%s6400_s3 + $0xf0] ss:$36 sps:$4 sm:$0xff]  }
 0x103   :  { %1526 = vmatpush2.bf16.msra.mxu0 %v4479_v61  ;;  %1447 = vmatprep.subr.bf16.mxu1 %v4484_v63  ;;  %v4561_v61 = vld [vmem:[%s6400_s3 + $0x140] ss:$36 sps:$4 sm:$0xff]   ;;  %v4564_v63 = vld [vmem:[%s6400_s3 + $0xac] ss:$36 sps:$4 sm:$0xff]  }
 0x104   :  { %1527 = vmatprep.subr.bf16.mxu0 %v4487_v0  ;;  %v4565_v0 = vld [vmem:[%s6400_s3 + $0x338] ss:$36 sps:$4 sm:$0xff]  }
 0x106   :  { %1448 = vmatpush2.bf16.msra.mxu1 %v4482_v1  ;;  %v4562_v1 = vld [vmem:[%s6400_s3 + $0xa8] ss:$36 sps:$4 sm:$0xff]  }
 0x107   :  { %1528 = vmatpush2.bf16.msra.mxu0 %v4485_v2  ;;  %1449 = vmatprep.subr.bf16.mxu1 %v4490_v3  ;;  %v4566_v2 = vld [vmem:[%s6400_s3 + $0xf8] ss:$36 sps:$4 sm:$0xff]   ;;  %v4569_v3 = vld [vmem:[%s6400_s3 + $0x64] ss:$36 sps:$4 sm:$0xff]  }
 0x108   :  { %1529 = vmatprep.subr.bf16.mxu0 %v4493_v4  ;;  %v4570_v4 = vld [vmem:[%s6400_s3 + $0x2f0] ss:$36 sps:$4 sm:$0xff]  }
 0x10a   :  { %1450 = vmatpush2.bf16.msra.mxu1 %v4488_v6  ;;  %v4567_v6 = vld [vmem:[%s6400_s3 + $0x60] ss:$36 sps:$4 sm:$0xff]  }
 0x10b   :  { %1530 = vmatpush2.bf16.msra.mxu0 %v4491_v8  ;;  %1451 = vmatprep.subr.bf16.mxu1 %v4496_v9  ;;  %v4571_v8 = vld [vmem:[%s6400_s3 + $0xb0] ss:$36 sps:$4 sm:$0xff]   ;;  %v4574_v9 = vld [vmem:[%s6400_s3 + $0x1c] ss:$36 sps:$4 sm:$0xff]  }
 0x10c   :  { %1531 = vmatprep.subr.bf16.mxu0 %v4499_v10  ;;  %v4575_v10 = vld [vmem:[%s6400_s3 + $0x2a8] ss:$36 sps:$4 sm:$0xff]  }
 0x10e   :  { %1452 = vmatpush2.bf16.msra.mxu1 %v4494_v12  ;;  %v4572_v12 = vld [vmem:[%s6400_s3 + $0x18] ss:$36 sps:$4 sm:$0xff]  }
 0x10f   :  { %1532 = vmatpush2.bf16.msra.mxu0 %v4497_v14  ;;  %1453 = vmatprep.subr.bf16.mxu1 %v4502_v15  ;;  %v4576_v14 = vld [vmem:[%s6400_s3 + $0x68] ss:$36 sps:$4 sm:$0xff]   ;;  %v4579_v15 = vld [vmem:[%s6400_s3 + $0x454] ss:$36 sps:$4 sm:$0xff]  }
 0x110   :  { %1533 = vmatprep.subr.bf16.mxu0 %v4505_v16  ;;  %v4580_v16 = vld [vmem:[%s6400_s3 + $0x260] ss:$36 sps:$4 sm:$0xff]  }
 0x112   :  { %1454 = vmatpush2.bf16.msra.mxu1 %v4500_v17  ;;  %v4577_v17 = vld [vmem:[%s6400_s3 + $0x450] ss:$36 sps:$4 sm:$0xff]  }
 0x113   :  { %1534 = vmatpush2.bf16.msra.mxu0 %v4503_v18  ;;  %1455 = vmatprep.subr.bf16.mxu1 %v4508_v19  ;;  %v4581_v18 = vld [vmem:[%s6400_s3 + $0x20] ss:$36 sps:$4 sm:$0xff]   ;;  %v4584_v19 = vld [vmem:[%s6400_s3 + $0x40c] ss:$36 sps:$4 sm:$0xff]  }
 0x114   :  { %1535 = vmatprep.subr.bf16.mxu0 %v4511_v20  ;;  %v4650_v20 = vld [vmem:[%s6402_s5 + $0x22c] ss:$12 sps:$4 sm:$0xff]  }
 0x116   :  { %1456 = vmatpush2.bf16.msra.mxu1 %v4506_v22  ;;  %v4582_v22 = vld [vmem:[%s6400_s3 + $0x408] ss:$36 sps:$4 sm:$0xff]  }
 0x117   :  { %1536 = vmatpush2.bf16.msra.mxu0 %v4509_v23  ;;  %1457 = vmatprep.subr.bf16.mxu1 %v4514_v24  ;;  %v4587_v23 = vld [vmem:[%s6400_s3 + $0x3c4] ss:$36 sps:$4 sm:$0xff]  }
 0x118   :  { %1537 = vmatprep.subr.bf16.mxu0 %v4517_v25  ;;  %v4648_v24 = vld [vmem:[%s6402_s5 + $0x228] ss:$12 sps:$4 sm:$0xff]  }
 0x119   :  { %v4656_v25 = vld [vmem:[%s6402_s5 + $0x214] ss:$12 sps:$4 sm:$0xff]  }
 0x11a   :  { %1458 = vmatpush2.bf16.msra.mxu1 %v4512_v26  ;;  %v4585_v26 = vld [vmem:[%s6400_s3 + $0x3c0] ss:$36 sps:$4 sm:$0xff]  }
 0x11b   :  { %1538 = vmatpush2.bf16.msra.mxu0 %v4515_v27  ;;  %1560 = vmatprep.subr.bf16.mxu1 %v4520_v28  ;;  %v4590_v27 = vld [vmem:[%s6400_s3 + $0x37c] ss:$36 sps:$4 sm:$0xff]  }
 0x11c   :  { %1539 = vmatprep.subr.bf16.mxu0 %v4523_v29  ;;  %v4654_v28 = vld [vmem:[%s6402_s5 + $0x210] ss:$12 sps:$4 sm:$0xff]  }
 0x11d   :  { %1460 = vmatmul.mubr.bf16.vlgmr.msra.gmra.mxu1 %v5161_v13  ;;  %v4662_v29 = vld [vmem:[%s6402_s5 + $0x1fc] ss:$12 sps:$4 sm:$0xff]  }
 0x11e   :  { %1561 = vmatpush1.bf16.msra.mxu1 %v4518_v30  ;;  %1582 = vmatprep.mubr.bf16.mxu1 %v4902_v57  ;;  %v4588_v30 = vld [vmem:[%s6400_s3 + $0x378] ss:$36 sps:$4 sm:$0xff]  }
 0x11f   :  { %1540 = vmatpush2.bf16.msra.mxu0 %v4521_v31  ;;  %1562 = vmatprep.subr.bf16.mxu1 %v4526_v32  ;;  %v4593_v31 = vld [vmem:[%s6400_s3 + $0x334] ss:$36 sps:$4 sm:$0xff]  }
 0x120   :  { %1642 = vmatprep.subr.bf16.mxu0 %v4529_v33  ;;  %v4660_v32 = vld [vmem:[%s6402_s5 + $0x1f8] ss:$12 sps:$4 sm:$0xff]  }
 0x121   :  { %v4665_v33 = vld [vmem:[%s6402_s5 + $0x1e4] ss:$12 sps:$4 sm:$0xff]  }
 0x122   :  { %1542 = vmatmul.mubr.bf16.vlgmr.msra.gmra.mxu0 %v5161_v13  ;;  %1563 = vmatpush1.bf16.msra.mxu1 %v4524_v34  ;;  %v4591_v34 = vld [vmem:[%s6400_s3 + $0x330] ss:$36 sps:$4 sm:$0xff]  }
 0x123   :  { %1643 = vmatpush1.bf16.msra.mxu0 %v4527_v35  ;;  %1564 = vmatprep.subr.bf16.mxu1 %v4532_v36  ;;  %v4596_v35 = vld [vmem:[%s6400_s3 + $0x2ec] ss:$36 sps:$4 sm:$0xff]  }
 0x124   :  { %1644 = vmatprep.subr.bf16.mxu0 %v4535_v37  ;;  %1664 = vmatprep.mubr.bf16.mxu0 %v4902_v57  ;;  %v4663_v36 = vld [vmem:[%s6402_s5 + $0x1e0] ss:$12 sps:$4 sm:$0xff]  }
 0x125   :  { %v4671_v37 = vld [vmem:[%s6402_s5 + $0x1cc] ss:$12 sps:$4 sm:$0xff]  }
 0x126   :  { %1565 = vmatpush1.bf16.msra.mxu1 %v4530_v38  ;;  %v4594_v38 = vld [vmem:[%s6400_s3 + $0x2e8] ss:$36 sps:$4 sm:$0xff]  }
 0x127   :  { %1645 = vmatpush1.bf16.msra.mxu0 %v4533_v39  ;;  %1591 = vmatprep.subr.bf16.mxu1 %v4538_v40  ;;  %v4599_v39 = vld [vmem:[%s6400_s3 + $0x2a4] ss:$36 sps:$4 sm:$0xff]  }
 0x128   :  { %1646 = vmatprep.subr.bf16.mxu0 %v4541_v41  ;;  %v4669_v40 = vld [vmem:[%s6402_s5 + $0x1c8] ss:$12 sps:$4 sm:$0xff]  }
 0x129   :  { %3939 = vmatmul.mubr.msk.bf16.vlgmr.msra.gmra.mxu1 %vm1341_vm3, %v5175_v21  ;;  %v4677_v41 = vld [vmem:[%s6402_s5 + $0x1b4] ss:$12 sps:$4 sm:$0xff]  }
 0x12a   :  { %1592 = vmatpush1.bf16.msra.mxu1 %v4536_v42  ;;  %1623 = vmatprep.mubr.bf16.mxu1 %v5158_v11  ;;  %v4597_v42 = vld [vmem:[%s6400_s3 + $0x2a0] ss:$36 sps:$4 sm:$0xff]  }
 0x12b   :  { %1647 = vmatpush1.bf16.msra.mxu0 %v4539_v43  ;;  %1593 = vmatprep.subr.bf16.mxu1 %v4544_v44  ;;  %v4602_v43 = vld [vmem:[%s6400_s3 + $0x25c] ss:$36 sps:$4 sm:$0xff]  }
 0x12c   :  { %4156 = vmatprep.subr.bf16.mxu0 %v4545_v45  ;;  %v4675_v44 = vld [vmem:[%s6402_s5 + $0x1b0] ss:$12 sps:$4 sm:$0xff]  }
 0x12d   :  { %v4683_v45 = vld [vmem:[%s6402_s5 + $0x19c] ss:$12 sps:$4 sm:$0xff]  }
 0x12e   :  { %1594 = vmatpush1.bf16.msra.mxu1 %v4542_v46  ;;  %3940 = vmatmul.mubr.msk.bf16.vlgmr.msra.gmra.mxu0 %vm1341_vm3, %v5175_v21  ;;  %v4600_v46 = vld [vmem:[%s6400_s3 + $0x258] ss:$36 sps:$4 sm:$0xff]  }
 0x12f   :  { %4157 = vmatpush3.bf16.msra.mxu0 %v4546_v47  ;;  %1705 = vmatprep.mubr.bf16.mxu0 %v5158_v11  ;;  %v4556_v11 = vld [vmem:[%s6400_s3 + $0x188] ss:$36 sps:$4 sm:$0xff]   ;;  %v4681_v47 = vld [vmem:[%s6402_s5 + $0x198] ss:$12 sps:$4 sm:$0xff]  }
 0x130   :  { %1595 = vmatprep.subr.bf16.mxu1 %v4549_v48  ;;  %4158 = vmatprep.subr.bf16.mxu0 %v4550_v49  ;;  %v4689_v48 = vld [vmem:[%s6402_s5 + $0x184] ss:$12 sps:$4 sm:$0xff]  }
 0x131   :  { %v4603_v49 = vld [vmem:[%s6400_s3 + $0x530] ss:$36 sps:$4 sm:$0xff]  }
 0x132   :  { %1596 = vmatpush1.bf16.msra.mxu1 %v4547_v50  ;;  %v4687_v50 = vld [vmem:[%s6402_s5 + $0x180] ss:$12 sps:$4 sm:$0xff]  }
 0x133   :  { %4159 = vmatpush3.bf16.msra.mxu0 %v4551_v51  ;;  %1597 = vmatprep.subr.bf16.mxu1 %v4554_v52  ;;  %v4695_v51 = vld [vmem:[%s6402_s5 + $0x2ec] ss:$12 sps:$4 sm:$0xff]  }
 0x134   :  { %4160 = vmatprep.subr.bf16.mxu0 %v4555_v53  ;;  %v4604_v52 = vld [vmem:[%s6400_s3 + $0x4e8] ss:$36 sps:$4 sm:$0xff]  }
 0x135   :  { %v4693_v53 = vld [vmem:[%s6402_s5 + $0x2e8] ss:$12 sps:$4 sm:$0xff]  }
 0x136   :  { %1598 = vmatpush1.bf16.msra.mxu1 %v4552_v54  ;;  %v4605_v54 = vld [vmem:[%s6400_s3 + $0x4a0] ss:$36 sps:$4 sm:$0xff]  }
 0x137   :  { %4161 = vmatpush3.bf16.msra.mxu0 %v4556_v11  ;;  %1599 = vmatprep.subr.bf16.mxu1 %v4559_v55  ;;  %v4608_v11 = vld [vmem:[%s6402_s5 + $0xac] ss:$12 sps:$4 sm:$0xff]   ;;  %v4699_v55 = vld [vmem:[%s6402_s5 + $0x2d0] ss:$12 sps:$4 sm:$0xff]  }
 0x138   :  { %4162 = vmatprep.subr.bf16.mxu0 %v4560_v56  ;;  %v4707_v56 = vld [vmem:[%s6402_s5 + $0x2bc] ss:$12 sps:$4 sm:$0xff]  }
 0x13a   :  { %1600 = vmatpush1.bf16.msra.mxu1 %v4557_v58  ;;  %v4606_v58 = vld [vmem:[%s6402_s5 + $0xa8] ss:$12 sps:$4 sm:$0xff]  }
 0x13b   :  { %4163 = vmatpush3.bf16.msra.mxu0 %v4561_v61  ;;  %1601 = vmatprep.subr.bf16.mxu1 %v4564_v63  ;;  %v4611_v61 = vld [vmem:[%s6402_s5 + $0x94] ss:$12 sps:$4 sm:$0xff]   ;;  %v4705_v63 = vld [vmem:[%s6402_s5 + $0x2b8] ss:$12 sps:$4 sm:$0xff]  }
 0x13c   :  { %4164 = vmatprep.subr.bf16.mxu0 %v4565_v0  ;;  %v4713_v0 = vld [vmem:[%s6402_s5 + $0x2a4] ss:$12 sps:$4 sm:$0xff]  }
 0x13e   :  { %1602 = vmatpush1.bf16.msra.mxu1 %v4562_v1  ;;  %v4609_v1 = vld [vmem:[%s6402_s5 + $0x90] ss:$12 sps:$4 sm:$0xff]  }
 0x13f   :  { %4165 = vmatpush3.bf16.msra.mxu0 %v4566_v2  ;;  %1603 = vmatprep.subr.bf16.mxu1 %v4569_v3  ;;  %v4614_v2 = vld [vmem:[%s6402_s5 + $0x7c] ss:$12 sps:$4 sm:$0xff]   ;;  %v4711_v3 = vld [vmem:[%s6402_s5 + $0x2a0] ss:$12 sps:$4 sm:$0xff]  }
 0x140   :  { %4166 = vmatprep.subr.bf16.mxu0 %v4570_v4  ;;  %v4612_v4 = vld [vmem:[%s6402_s5 + $0x78] ss:$12 sps:$4 sm:$0xff]  }
 0x142   :  { %1604 = vmatpush1.bf16.msra.mxu1 %v4567_v6  ;;  %v4617_v6 = vld [vmem:[%s6402_s5 + $0x64] ss:$12 sps:$4 sm:$0xff]  }
 0x143   :  { %4167 = vmatpush3.bf16.msra.mxu0 %v4571_v8  ;;  %1605 = vmatprep.subr.bf16.mxu1 %v4574_v9  ;;  %v4717_v8 = vld [vmem:[%s6402_s5 + $0x288] ss:$12 sps:$4 sm:$0xff]  }
 0x144   :  { %4168 = vmatprep.subr.bf16.mxu0 %v4575_v10  ;;  %v4725_v9 = vld [vmem:[%s6402_s5 + $0x274] ss:$12 sps:$4 sm:$0xff]  }
 0x145   :  { %v4615_v10 = vld [vmem:[%s6402_s5 + $0x60] ss:$12 sps:$4 sm:$0xff]  }
 0x146   :  { %1606 = vmatpush1.bf16.msra.mxu1 %v4572_v12  ;;  %v4620_v12 = vld [vmem:[%s6402_s5 + $0x4c] ss:$12 sps:$4 sm:$0xff]  }
 0x147   :  { %4169 = vmatpush3.bf16.msra.mxu0 %v4576_v14  ;;  %1607 = vmatprep.subr.bf16.mxu1 %v4579_v15  ;;  %v4723_v14 = vld [vmem:[%s6402_s5 + $0x270] ss:$12 sps:$4 sm:$0xff]  }
 0x148   :  { %4170 = vmatprep.subr.bf16.mxu0 %v4580_v16  ;;  %v4731_v15 = vld [vmem:[%s6402_s5 + $0x25c] ss:$12 sps:$4 sm:$0xff]  }
 0x149   :  { %v4618_v16 = vld [vmem:[%s6402_s5 + $0x48] ss:$12 sps:$4 sm:$0xff]  }
 0x14a   :  { %1608 = vmatpush2.bf16.msra.mxu1 %v4577_v17  ;;  %v4623_v17 = vld [vmem:[%s6402_s5 + $0x34] ss:$12 sps:$4 sm:$0xff]  }
 0x14b   :  { %4171 = vmatpush3.bf16.msra.mxu0 %v4581_v18  ;;  %1609 = vmatprep.subr.bf16.mxu1 %v4584_v19  ;;  %v4729_v18 = vld [vmem:[%s6402_s5 + $0x258] ss:$12 sps:$4 sm:$0xff]  }
 0x14c   :  { %3193 = vmatprep.subr.bf16.mxu0 %v4650_v20  ;;  %v4737_v19 = vld [vmem:[%s6402_s5 + $0x244] ss:$12 sps:$4 sm:$0xff]  }
 0x14d   :  { %v4621_v20 = vld [vmem:[%s6402_s5 + $0x30] ss:$12 sps:$4 sm:$0xff]  }
 0x14e   :  { %1610 = vmatpush2.bf16.msra.mxu1 %v4582_v22  ;;  %1706 = vmatmul.mubr.bf16.vlgmr.msra.gmra.mxu0 %v5161_v13  ;;  %v4626_v22 = vld [vmem:[%s6402_s5 + $0x1c] ss:$12 sps:$4 sm:$0xff]  }
 0x14f   :  { %1611 = vmatprep.subr.bf16.mxu1 %v4587_v23  ;;  %3194 = vmatpush1.bf16.msra.mxu0 %v4648_v24  ;;  %v4735_v23 = vld [vmem:[%s6402_s5 + $0x240] ss:$12 sps:$4 sm:$0xff]  }
 0x150   :  { %3195 = vmatprep.subr.bf16.mxu0 %v4656_v25  ;;  %v4752_v24 = vld [vmem:[%s6402_s5 + $0x52c] ss:$12 sps:$4 sm:$0xff]  }
 0x151   :  { %v4624_v25 = vld [vmem:[%s6402_s5 + $0x18] ss:$12 sps:$4 sm:$0xff]  }
 0x152   :  { %1612 = vmatpush2.bf16.msra.mxu1 %v4585_v26  ;;  %v4629_v26 = vld [vmem:[%s6402_s5 + $0x4] ss:$12 sps:$4 sm:$0xff]  }
 0x153   :  { %1613 = vmatprep.subr.bf16.mxu1 %v4590_v27  ;;  %3196 = vmatpush1.bf16.msra.mxu0 %v4654_v28  ;;  %v4627_v27 = vld [vmem:[%s6402_s5] ss:$12 sps:$4 sm:$0xff]  }
 0x154   :  { %3197 = vmatprep.subr.bf16.mxu0 %v4662_v29  ;;  %v4632_v28 = vld [vmem:[%s6402_s5 + $0x16c] ss:$12 sps:$4 sm:$0xff]   ;;  %v4630_v29 = vld [vmem:[%s6402_s5 + $0x168] ss:$12 sps:$4 sm:$0xff]  }
 0x156   :  { %1614 = vmatpush2.bf16.msra.mxu1 %v4588_v30  ;;  %v4635_v30 = vld [vmem:[%s6402_s5 + $0x154] ss:$12 sps:$4 sm:$0xff]  }
 0x157   :  { %1615 = vmatprep.subr.bf16.mxu1 %v4593_v31  ;;  %3198 = vmatpush1.bf16.msra.mxu0 %v4660_v32  ;;  %v4633_v32 = vld [vmem:[%s6402_s5 + $0x150] ss:$12 sps:$4 sm:$0xff]  }
 0x158   :  { %3199 = vmatprep.subr.bf16.mxu0 %v4665_v33  ;;  %v4638_v33 = vld [vmem:[%s6402_s5 + $0x13c] ss:$12 sps:$4 sm:$0xff]  }
 0x15a   :  { %1616 = vmatpush2.bf16.msra.mxu1 %v4591_v34 }
 0x15b   :  { %1617 = vmatprep.subr.bf16.mxu1 %v4596_v35  ;;  %3200 = vmatpush1.bf16.msra.mxu0 %v4663_v36  ;;  %v5745_v35 = vld [vmem:[%s6401_s4] sm:$0xff] }
 0x15c   :  { %3201 = vmatprep.subr.bf16.mxu0 %v4671_v37  ;;  %v429_v36 = vrot.slane %v5745_v35, %v5145_v62 }
 0x15e   :  { %1618 = vmatpush2.bf16.msra.mxu1 %v4594_v38  ;;  %v4636_v38 = vld [vmem:[%s6402_s5 + $0x138] ss:$12 sps:$4 sm:$0xff]  }
 0x15f   :  { %1619 = vmatprep.subr.bf16.mxu1 %v4599_v39  ;;  %3202 = vmatpush1.bf16.msra.mxu0 %v4669_v40  ;;  %v4641_v39 = vld [vmem:[%s6402_s5 + $0x124] ss:$12 sps:$4 sm:$0xff]  }
 0x160   :  { %3203 = vmatprep.subr.bf16.mxu0 %v4677_v41 }
 0x162   :  { %1620 = vmatpush2.bf16.msra.mxu1 %v4597_v42 }
 0x163   :  { %1621 = vmatprep.subr.bf16.mxu1 %v4602_v43  ;;  %3204 = vmatpush1.bf16.msra.mxu0 %v4675_v44  ;;  %v4639_v43 = vld [vmem:[%s6402_s5 + $0x120] ss:$12 sps:$4 sm:$0xff]  }
 0x164   :  { %3205 = vmatprep.subr.bf16.mxu0 %v4683_v45  ;;  %v4644_v45 = vld [vmem:[%s6402_s5 + $0x10c] ss:$12 sps:$4 sm:$0xff]  }
 0x166   :  { %1622 = vmatpush2.bf16.msra.mxu1 %v4600_v46 }
 0x167   :  { %4326 = vmatprep.subr.bf16.mxu1 %v4900_v5  ;;  %3206 = vmatpush1.bf16.msra.mxu0 %v4681_v47 }
 0x168   :  { %3207 = vmatprep.subr.bf16.mxu0 %v4689_v48 }
 0x169   :  { %1624 = vmatmul.mubr.bf16.vlgmr.msra.gmra.mxu1 %v5161_v13  ;;  %v4701_v13 = vld [vmem:[%s6402_s5 + $0x2d4] ss:$12 sps:$4 sm:$0xff]  }
 0x16a   :  { %4327 = vmatpush3.bf16.msra.mxu1 %v4603_v49  ;;  %4332 = vmatprep.mubr.msk.bf16.mxu1 %vm4901_vm2, %v4900_v5 }
 0x16b   :  { %4328 = vmatprep.subr.bf16.mxu1 %v4900_v5  ;;  %3208 = vmatpush1.bf16.msra.mxu0 %v4687_v50  ;;  %v4642_v50 = vld [vmem:[%s6402_s5 + $0x108] ss:$12 sps:$4 sm:$0xff]  }
 0x16c   :  { %3209 = vmatprep.subr.bf16.mxu0 %v4695_v51 }
 0x16e   :  { %4329 = vmatpush3.bf16.msra.mxu1 %v4604_v52  ;;  %v4647_v52 = vld [vmem:[%s6402_s5 + $0xf4] ss:$12 sps:$4 sm:$0xff]  }
 0x16f   :  { %4330 = vmatprep.subr.bf16.mxu1 %v4900_v5  ;;  %3210 = vmatpush2.bf16.msra.mxu0 %v4693_v53 }
 0x170   :  { %3211 = vmatprep.subr.bf16.mxu0 %v4701_v13 }
 0x172   :  { %4331 = vmatpush3.bf16.msra.mxu1 %v4605_v54  ;;  %v425_v54 = vrot.slane %v5745_v35, %v5139_v60 }
 0x173   :  { %3152 = vmatprep.subr.bf16.mxu1 %v4608_v11  ;;  %3212 = vmatpush2.bf16.msra.mxu0 %v4699_v55  ;;  %v4645_v55 = vld [vmem:[%s6402_s5 + $0xf0] ss:$12 sps:$4 sm:$0xff]  }
 0x174   :  { %3213 = vmatprep.subr.bf16.mxu0 %v4707_v56  ;;  %v4653_v56 = vld [vmem:[%s6402_s5 + $0xdc] ss:$12 sps:$4 sm:$0xff]  }
 0x175   :  { %4333 = vmatmul.mubr.msk.bf16.vlgmr.msra.gmra.mxu1 %vm1341_vm3, %v5175_v21  ;;  %v4719_v21 = vld [vmem:[%s6402_s5 + $0x28c] ss:$12 sps:$4 sm:$0xff]  }
 0x176   :  { %3153 = vmatpush1.bf16.msra.mxu1 %v4606_v58 }
 0x177   :  { %3154 = vmatprep.subr.bf16.mxu1 %v4611_v61  ;;  %3214 = vmatpush2.bf16.msra.mxu0 %v4705_v63  ;;  %v4651_v63 = vld [vmem:[%s6402_s5 + $0xd8] ss:$12 sps:$4 sm:$0xff]  }
 0x178   :  { %3215 = vmatprep.subr.bf16.mxu0 %v4713_v0 }
 0x17a   :  { %3155 = vmatpush1.bf16.msra.mxu1 %v4609_v1  ;;  %v4659_v1 = vld [vmem:[%s6402_s5 + $0xc4] ss:$12 sps:$4 sm:$0xff]  }
 0x17b   :  { %3156 = vmatprep.subr.bf16.mxu1 %v4614_v2  ;;  %3216 = vmatpush2.bf16.msra.mxu0 %v4711_v3  ;;  %v4657_v2 = vld [vmem:[%s6402_s5 + $0xc0] ss:$12 sps:$4 sm:$0xff]  }
 0x17c   :  { %3217 = vmatprep.subr.bf16.mxu0 %v4719_v21  ;;  %v4668_v21 = vld [vmem:[%s6402_s5 + $0x3ac] ss:$12 sps:$4 sm:$0xff]  }
 0x17e   :  { %3157 = vmatpush1.bf16.msra.mxu1 %v4612_v4  ;;  %v4666_v4 = vld [vmem:[%s6402_s5 + $0x3a8] ss:$12 sps:$4 sm:$0xff]  }
 0x17f   :  { %3158 = vmatprep.subr.bf16.mxu1 %v4617_v6  ;;  %3218 = vmatpush2.bf16.msra.mxu0 %v4717_v8  ;;  %v4674_v8 = vld [vmem:[%s6402_s5 + $0x394] ss:$12 sps:$4 sm:$0xff]  }
 0x180   :  { %3219 = vmatprep.subr.bf16.mxu0 %v4725_v9  ;;  %v4672_v9 = vld [vmem:[%s6402_s5 + $0x390] ss:$12 sps:$4 sm:$0xff]  }
 0x182   :  { %3159 = vmatpush1.bf16.msra.mxu1 %v4615_v10  ;;  %v4680_v10 = vld [vmem:[%s6402_s5 + $0x37c] ss:$12 sps:$4 sm:$0xff]  }
 0x183   :  { %3160 = vmatprep.subr.bf16.mxu1 %v4620_v12  ;;  %3220 = vmatpush2.bf16.msra.mxu0 %v4723_v14  ;;  %v4678_v12 = vld [vmem:[%s6402_s5 + $0x378] ss:$12 sps:$4 sm:$0xff]  }
 0x184   :  { %3221 = vmatprep.subr.bf16.mxu0 %v4731_v15  ;;  %v4686_v14 = vld [vmem:[%s6402_s5 + $0x364] ss:$12 sps:$4 sm:$0xff]   ;;  %v4684_v15 = vld [vmem:[%s6402_s5 + $0x360] ss:$12 sps:$4 sm:$0xff]  }
 0x186   :  { %3161 = vmatpush1.bf16.msra.mxu1 %v4618_v16  ;;  %v4692_v16 = vld [vmem:[%s6402_s5 + $0x34c] ss:$12 sps:$4 sm:$0xff]  }
 0x187   :  { %3162 = vmatprep.subr.bf16.mxu1 %v4623_v17  ;;  %3222 = vmatpush2.bf16.msra.mxu0 %v4729_v18  ;;  %v4690_v17 = vld [vmem:[%s6402_s5 + $0x348] ss:$12 sps:$4 sm:$0xff]  }
 0x188   :  { %3223 = vmatprep.subr.bf16.mxu0 %v4737_v19  ;;  %v4698_v18 = vld [vmem:[%s6402_s5 + $0x334] ss:$12 sps:$4 sm:$0xff]   ;;  %v4696_v19 = vld [vmem:[%s6402_s5 + $0x330] ss:$12 sps:$4 sm:$0xff]  }
 0x18a   :  { %3163 = vmatpush1.bf16.msra.mxu1 %v4621_v20  ;;  %v4704_v20 = vld [vmem:[%s6402_s5 + $0x31c] ss:$12 sps:$4 sm:$0xff]  }
 0x18b   :  { %3164 = vmatprep.subr.bf16.mxu1 %v4626_v22  ;;  %3224 = vmatpush2.bf16.msra.mxu0 %v4735_v23  ;;  %v4702_v22 = vld [vmem:[%s6402_s5 + $0x318] ss:$12 sps:$4 sm:$0xff]  }
 0x18c   :  { %3275 = vmatprep.subr.bf16.mxu0 %v4752_v24  ;;  %v4710_v23 = vld [vmem:[%s6402_s5 + $0x304] ss:$12 sps:$4 sm:$0xff]   ;;  %v4708_v24 = vld [vmem:[%s6402_s5 + $0x300] ss:$12 sps:$4 sm:$0xff]  }
 0x18e   :  { %3165 = vmatpush1.bf16.msra.mxu1 %v4624_v25  ;;  %v4716_v25 = vld [vmem:[%s6402_s5 + $0x46c] ss:$12 sps:$4 sm:$0xff]  }
 0x18f   :  { %3166 = vmatprep.subr.bf16.mxu1 %v4629_v26  ;;  %v4714_v26 = vld [vmem:[%s6402_s5 + $0x468] ss:$12 sps:$4 sm:$0xff]  }
 0x192   :  { %3167 = vmatpush1.bf16.msra.mxu1 %v4627_v27  ;;  %v4722_v27 = vld [vmem:[%s6402_s5 + $0x454] ss:$12 sps:$4 sm:$0xff]  }
 0x193   :  { %3168 = vmatprep.subr.bf16.mxu1 %v4632_v28  ;;  %v4720_v28 = vld [vmem:[%s6402_s5 + $0x450] ss:$12 sps:$4 sm:$0xff]  }
 0x196   :  { %3169 = vmatpush2.bf16.msra.mxu1 %v4630_v29  ;;  %v1379_v31 = vpop.f32.mrf.mxu0  ;;  %v4728_v29 = vld [vmem:[%s6402_s5 + $0x43c] ss:$12 sps:$4 sm:$0xff]  }
 0x197   :  { %3170 = vmatprep.subr.bf16.mxu1 %v4635_v30  ;;  %v1380_v61 = vadd.f32 %v1379_v31, %v425_v54  ;;  %v436_v30 = vsub.s32 3, %v5136_v59  ;;  %v433_v31 = vrot.slane %v5745_v35, %v5150_v7 }
 0x198   :  { %v1381_v34 = vpop.f32.mrf.mxu0 }
 0x199   :  { %v1382_v42 = vadd.f32 %v1381_v34, %v429_v36  ;;  %v437_v34 = vrot.slane %v5745_v35, %v436_v30  ;;  %v4792_v30 = vld [vmem:[%s6402_s5 + $0x648] ss:$12 sps:$4 sm:$0xff]  }
 0x19a   :  { %3171 = vmatpush2.bf16.msra.mxu1 %v4633_v32  ;;  %v1383_v37 = vpop.f32.mrf.mxu0  ;;  %v4726_v32 = vld [vmem:[%s6402_s5 + $0x438] ss:$12 sps:$4 sm:$0xff]  }
 0x19b   :  { %3172 = vmatprep.subr.bf16.mxu1 %v4638_v33  ;;  %v4734_v33 = vld [vmem:[%s6402_s5 + $0x424] ss:$12 sps:$4 sm:$0xff]  }
 0x19c   :  { %v1384_v40 = vpop.f32.mrf.mxu0 }
 0x19d   :  { %v1420_v41 = vpop.f32.mrf.mxu1  ;;  %v4740_v40 = vld [vmem:[%s6402_s5 + $0x40c] ss:$12 sps:$4 sm:$0xff]  }
 0x19e   :  { %3173 = vmatpush2.bf16.msra.mxu1 %v4636_v38  ;;  %v1421_v0 = vadd.f32 %v1420_v41, %v1380_v61  ;;  %v4732_v38 = vld [vmem:[%s6402_s5 + $0x420] ss:$12 sps:$4 sm:$0xff]   ;;  %v4750_v61 = vld [vmem:[%s6402_s5 + $0x528] ss:$12 sps:$4 sm:$0xff]  }
 0x19f   :  { %v1422_v44 = vpop.f32.mrf.mxu1  ;;  %3174 = vmatprep.subr.bf16.mxu1 %v4641_v39 }
 0x1a0   :  { %v1423_v46 = vadd.f32 %v1422_v44, %v1382_v42  ;;  %v1753_v3 = vmax.f32 %v1421_v0, 0.0  ;;  %v440_v44 = vsub.s32 4, %v5136_v59  ;;  %v4746_v0 = vld [vmem:[%s6402_s5 + $0x3dc] ss:$12 sps:$4 sm:$0xff]  }
 0x1a1   :  { %v1424_v47 = vpop.f32.mrf.mxu1 }
 0x1a2   :  { %v1754_v48 = vmax.f32 %v1423_v46, 0.0  ;;  %v5761_v49 = vpop.f32.mrf.mxu0  ;;  %3175 = vmatpush2.bf16.msra.mxu1 %v4639_v43  ;;  %v5797_v6 = vpack.c.bf16 %v1753_v3, %v1753_v3  ;;  %v444_v47 = vsub.s32 5, %v5136_v59 }
 0x1a3   :  { %v1425_v51 = vpop.f32.mrf.mxu1  ;;  %3176 = vmatprep.subr.bf16.mxu1 %v4644_v45 }
 0x1a4   :  { %v5769_v53 = vpack.c.bf16 %v1754_v48, %v1754_v48  ;;  %v5771_v13 = vpop.f32.mrf.mxu0  ;;  %v4738_v48 = vld [vmem:[%s6402_s5 + $0x408] ss:$12 sps:$4 sm:$0xff]  }
 0x1a6   :  { %v1506_v11 = vpop.f32.mrf.mxu0  ;;  %3177 = vmatpush2.bf16.msra.mxu1 %v4642_v50  ;;  %3184 = vmatprep.mubr.bf16.mxu1 %v5769_v53 }
 0x1a7   :  { %3178 = vmatprep.subr.bf16.mxu1 %v4647_v52  ;;  %v441_v11 = vrot.slane %v5745_v35, %v440_v44  ;;  %v4809_v44 = vld [vmem:[%s6402_s5 + $0x600] ss:$12 sps:$4 sm:$0xff]  }
 0x1a8   :  { %v1507_v58 = vpop.f32.mrf.mxu0 }
 0x1a9   :  { %v4741_v58 = vld [vmem:[%s6402_s5 + $0x3f0] ss:$12 sps:$4 sm:$0xff]  }
 0x1aa   :  { %3179 = vmatpush2.bf16.msra.mxu1 %v4645_v55  ;;  %v445_v55 = vrot.slane %v5745_v35, %v444_v47  ;;  %v4773_v47 = vld [vmem:[%s6402_s5 + $0x484] ss:$12 sps:$4 sm:$0xff]  }
 0x1ab   :  { %3180 = vmatprep.subr.bf16.mxu1 %v4653_v56 }
 0x1ae   :  { %3181 = vmatpush2.bf16.msra.mxu1 %v4651_v63 }
 0x1af   :  { %3182 = vmatprep.subr.bf16.mxu1 %v4659_v1  ;;  %v4755_v1 = vld [vmem:[%s6402_s5 + $0x514] ss:$12 sps:$4 sm:$0xff]  }
 0x1b2   :  { %3183 = vmatpush2.bf16.msra.mxu1 %v4657_v2 }
 0x1b3   :  { %3234 = vmatprep.subr.bf16.mxu1 %v4668_v21 }
 0x1b5   :  { %3185 = vmatmul.mubr.bf16.vlgmr.msra.gmra.mxu1 %v5797_v6 }
 0x1b6   :  { %3235 = vmatpush1.bf16.msra.mxu1 %v4666_v4 }
 0x1b7   :  { %3236 = vmatprep.subr.bf16.mxu1 %v4674_v8  ;;  %v4744_v8 = vld [vmem:[%s6402_s5 + $0x3d8] ss:$12 sps:$4 sm:$0xff]  }
 0x1ba   :  { %3237 = vmatpush1.bf16.msra.mxu1 %v4672_v9  ;;  %v4753_v9 = vld [vmem:[%s6402_s5 + $0x510] ss:$12 sps:$4 sm:$0xff]  }
 0x1bb   :  { %3238 = vmatprep.subr.bf16.mxu1 %v4680_v10 }
 0x1be   :  { %3239 = vmatpush1.bf16.msra.mxu1 %v4678_v12 }
 0x1bf   :  { %3240 = vmatprep.subr.bf16.mxu1 %v4686_v14  ;;  %v4749_v14 = vld [vmem:[%s6402_s5 + $0x3c4] ss:$12 sps:$4 sm:$0xff]  }
 0x1c2   :  { %3241 = vmatpush1.bf16.msra.mxu1 %v4684_v15  ;;  %v4758_v15 = vld [vmem:[%s6402_s5 + $0x4fc] ss:$12 sps:$4 sm:$0xff]  }
 0x1c3   :  { %3242 = vmatprep.subr.bf16.mxu1 %v4692_v16 }
 0x1c6   :  { %3243 = vmatpush1.bf16.msra.mxu1 %v4690_v17 }
 0x1c7   :  { %3244 = vmatprep.subr.bf16.mxu1 %v4698_v18 }
 0x1ca   :  { %3245 = vmatpush1.bf16.msra.mxu1 %v4696_v19 }
 0x1cb   :  { %3246 = vmatprep.subr.bf16.mxu1 %v4704_v20  ;;  %v4747_v20 = vld [vmem:[%s6402_s5 + $0x3c0] ss:$12 sps:$4 sm:$0xff]  }
 0x1ce   :  { %3247 = vmatpush1.bf16.msra.mxu1 %v4702_v22 }
 0x1cf   :  { %3248 = vmatprep.subr.bf16.mxu1 %v4710_v23 }
 0x1d2   :  { %3249 = vmatpush1.bf16.msra.mxu1 %v4708_v24  ;;  %v4756_v24 = vld [vmem:[%s6402_s5 + $0x4f8] ss:$12 sps:$4 sm:$0xff]  }
 0x1d3   :  { %3250 = vmatprep.subr.bf16.mxu1 %v4716_v25  ;;  %v4794_v25 = vld [vmem:[%s6402_s5 + $0x64c] ss:$12 sps:$4 sm:$0xff]  }
 0x1d6   :  { %3251 = vmatpush2.bf16.msra.mxu1 %v4714_v26 }
 0x1d7   :  { %3252 = vmatprep.subr.bf16.mxu1 %v4722_v27 }
 0x1da   :  { %3253 = vmatpush2.bf16.msra.mxu1 %v4720_v28  ;;  %v4761_v28 = vld [vmem:[%s6402_s5 + $0x4e4] ss:$12 sps:$4 sm:$0xff]  }
 0x1db   :  { %3254 = vmatprep.subr.bf16.mxu1 %v4728_v29 }
 0x1dd   :  { %v1461_v36 = vpop.f32.mrf.mxu1 }
 0x1de   :  { %v1462_v37 = vadd.f32 %v1461_v36, %v433_v31  ;;  %3255 = vmatpush2.bf16.msra.mxu1 %v4726_v32  ;;  %v4759_v32 = vld [vmem:[%s6402_s5 + $0x4e0] ss:$12 sps:$4 sm:$0xff]  }
 0x1df   :  { %v1463_v39 = vpop.f32.mrf.mxu1  ;;  %3256 = vmatprep.subr.bf16.mxu1 %v4734_v33  ;;  %v4800_v33 = vld [vmem:[%s6402_s5 + $0x634] ss:$12 sps:$4 sm:$0xff]   ;;  %v4764_v36 = vld [vmem:[%s6402_s5 + $0x4cc] ss:$12 sps:$4 sm:$0xff]  }
 0x1e0   :  { %v1503_v41 = vadd.f32 %v5761_v49, %v1462_v37  ;;  %v1464_v42 = vadd.f32 %v1463_v39, %v437_v34  ;;  %v4743_v49 = vld [vmem:[%s6402_s5 + $0x3f4] ss:$12 sps:$4 sm:$0xff]   ;;  %v4798_v37 = vld [vmem:[%s6402_s5 + $0x630] ss:$12 sps:$4 sm:$0xff]  }
 0x1e1   :  { %v1465_v43 = vpop.f32.mrf.mxu1  ;;  %v4806_v39 = vld [vmem:[%s6402_s5 + $0x61c] ss:$12 sps:$4 sm:$0xff]  }
 0x1e2   :  { %v1505_v45 = vadd.f32 %v5771_v13, %v1464_v42  ;;  %v1543_v46 = vpop.f32.mrf.mxu0  ;;  %3257 = vmatpush2.bf16.msra.mxu1 %v4732_v38  ;;  %v1755_v50 = vmax.f32 %v1503_v41, 0.0  ;;  %v4762_v38 = vld [vmem:[%s6402_s5 + $0x4c8] ss:$12 sps:$4 sm:$0xff]   ;;  %v4765_v41 = vld [vmem:[%s6402_s5 + $0x4b0] ss:$12 sps:$4 sm:$0xff]  }
 0x1e3   :  { %v1466_v51 = vpop.f32.mrf.mxu1  ;;  %3258 = vmatprep.subr.bf16.mxu1 %v4740_v40  ;;  %v1544_v3 = vadd.f32 %v1543_v46, %v441_v11  ;;  %v4767_v40 = vld [vmem:[%s6402_s5 + $0x4b4] ss:$12 sps:$4 sm:$0xff]   ;;  %v4811_v42 = vld [vmem:[%s6402_s5 + $0x604] ss:$12 sps:$4 sm:$0xff]   ;;  %v4770_v43 = vld [vmem:[%s6402_s5 + $0x49c] ss:$12 sps:$4 sm:$0xff]  }
 0x1e4   :  { %v1756_v52 = vmax.f32 %v1505_v45, 0.0  ;;  %v1545_v54 = vpop.f32.mrf.mxu0  ;;  %v5893_v63 = vpack.c.bf16 %v1755_v50, %v1755_v50  ;;  %v4768_v45 = vld [vmem:[%s6402_s5 + $0x498] ss:$12 sps:$4 sm:$0xff]   ;;  %v4814_v46 = vld [vmem:[%s6402_s5 + $0x170] ss:$12 sps:$4 sm:$0xff]  }
 0x1e5   :  { %v1546_v4 = vadd.f32 %v1545_v54, %v445_v55  ;;  %v4776_v50 = vld [vmem:[%s6402_s5 + $0x5ec] ss:$12 sps:$4 sm:$0xff]   ;;  %v4774_v51 = vld [vmem:[%s6402_s5 + $0x5e8] ss:$12 sps:$4 sm:$0xff]  }
 0x1e6   :  { %v5884_v13 = vpack.c.bf16 %v1756_v52, %v1756_v52  ;;  %v1547_v56 = vpop.f32.mrf.mxu0  ;;  %3259 = vmatpush2.bf16.msra.mxu1 %v4738_v48  ;;  %v4771_v48 = vld [vmem:[%s6402_s5 + $0x480] ss:$12 sps:$4 sm:$0xff]   ;;  %v4777_v52 = vld [vmem:[%s6402_s5 + $0x5d0] ss:$12 sps:$4 sm:$0xff]   ;;  %v4780_v55 = vld [vmem:[%s6402_s5 + $0x5b8] ss:$12 sps:$4 sm:$0xff]  }
 0x1e7   :  { %3260 = vmatprep.subr.bf16.mxu1 %v4743_v49  ;;  %v4779_v49 = vld [vmem:[%s6402_s5 + $0x5d4] ss:$12 sps:$4 sm:$0xff]   ;;  %v4782_v54 = vld [vmem:[%s6402_s5 + $0x5bc] ss:$12 sps:$4 sm:$0xff]  }
 0x1e8   :  { %v1548_v2 = vpop.f32.mrf.mxu0  ;;  %3225 = vmatprep.mubr.bf16.mxu0 %v5884_v13 }
 0x1e9   :  { %v1584_v21 = vpop.f32.mrf.mxu1  ;;  %3226 = vmatmul.mubr.bf16.vlgmr.msra.gmra.mxu0 %v5893_v63  ;;  %v4788_v2 = vld [vmem:[%s6402_s5 + $0x58c] ss:$12 sps:$4 sm:$0xff]  }
 0x1ea   :  { %3261 = vmatpush2.bf16.msra.mxu1 %v4741_v58  ;;  %3276 = vmatpush1.bf16.msra.mxu0 %v4750_v61  ;;  %v1585_v10 = vadd.f32 %v1584_v21, %v1544_v3  ;;  %v4785_v58 = vld [vmem:[%s6402_s5 + $0x5a4] ss:$12 sps:$4 sm:$0xff]   ;;  %v4786_v3 = vld [vmem:[%s6402_s5 + $0x588] ss:$12 sps:$4 sm:$0xff]  }
 0x1eb   :  { %v1586_v12 = vpop.f32.mrf.mxu1  ;;  %3262 = vmatprep.subr.bf16.mxu1 %v4746_v0  ;;  %3277 = vmatprep.subr.bf16.mxu0 %v4755_v1  ;;  %v4783_v0 = vld [vmem:[%s6402_s5 + $0x5a0] ss:$12 sps:$4 sm:$0xff]  }
 0x1ec   :  { %v1587_v16 = vadd.f32 %v1586_v12, %v1546_v4  ;;  %v1757_v22 = vmax.f32 %v1585_v10, 0.0  ;;  %v4791_v21 = vld [vmem:[%s6402_s5 + $0x574] ss:$12 sps:$4 sm:$0xff]   ;;  %v4789_v4 = vld [vmem:[%s6402_s5 + $0x570] ss:$12 sps:$4 sm:$0xff]   ;;  %v448_v12 = vsub.s32 6, %v5136_v59 }
 0x1ed   :  { %v1588_v17 = vpop.f32.mrf.mxu1  ;;  %v4803_v10 = vld [vmem:[%s6402_s5 + $0x544] ss:$12 sps:$4 sm:$0xff]  }
 0x1ee   :  { %v1758_v18 = vmax.f32 %v1587_v16, 0.0  ;;  %v5915_v19 = vpop.f32.mrf.mxu0  ;;  %3263 = vmatpush2.bf16.msra.mxu1 %v4744_v8  ;;  %3278 = vmatpush1.bf16.msra.mxu0 %v4753_v9  ;;  %v5937_v31 = vpack.c.bf16 %v1757_v22, %v1757_v22  ;;  %v4797_v8 = vld [vmem:[%s6402_s5 + $0x55c] ss:$12 sps:$4 sm:$0xff]   ;;  %v4795_v9 = vld [vmem:[%s6402_s5 + $0x558] ss:$12 sps:$4 sm:$0xff]   ;;  %v449_v17 = vrot.slane %v5745_v35, %v448_v12 }
 0x1ef   :  { %v1589_v23 = vpop.f32.mrf.mxu1  ;;  %3264 = vmatprep.subr.bf16.mxu1 %v4749_v14  ;;  %3279 = vmatprep.subr.bf16.mxu0 %v4758_v15  ;;  %v4801_v14 = vld [vmem:[%s6402_s5 + $0x540] ss:$12 sps:$4 sm:$0xff]   ;;  %v452_v15 = vsub.s32 7, %v5136_v59  ;;  %v4807_v16 = vld [vmem:[%s6402_s5 + $0x2f0] ss:$12 sps:$4 sm:$0xff]  }
 0x1f0   :  { %v5926_v26 = vpack.c.bf16 %v1758_v18, %v1758_v18  ;;  %v5928_v27 = vpop.f32.mrf.mxu0  ;;  %v4839_v12 = vld [vmem:[%s6402_s5 + $0x20] ss:$12 sps:$4 sm:$0xff]  }
 0x1f1   :  { %v453_v18 = vrot.slane %v5745_v35, %v452_v15  ;;  %v4808_v35 = vld [vmem:[%s6402_s5 + $0x230] ss:$12 sps:$4 sm:$0xff]   ;;  %v4842_v15 = vld [vmem:[%s6402_s5 + $0xc8] ss:$12 sps:$4 sm:$0xff]  }
 0x1f2   :  { %v1670_v29 = vpop.f32.mrf.mxu0  ;;  %3265 = vmatpush2.bf16.msra.mxu1 %v4747_v20  ;;  %3266 = vmatprep.mubr.bf16.mxu1 %v5926_v26 }
 0x1f3   :  { %3280 = vmatpush1.bf16.msra.mxu0 %v4756_v24  ;;  %3324 = vmatprep.subr.bf16.mxu1 %v4794_v25 }
 0x1f4   :  { %v1671_v34 = vpop.f32.mrf.mxu0  ;;  %3281 = vmatprep.subr.bf16.mxu0 %v4761_v28 }
 0x1f5   :  { %3267 = vmatmul.mubr.bf16.vlgmr.msra.gmra.mxu1 %v5937_v31  ;;  %v3765_v34 = vld [vmem:[%s6401_s4 + $0x8] ss:$0 sm:$0xff] }
 0x1f6   :  { %3325 = vmatpush1.bf16.msra.mxu1 %v4792_v30  ;;  %3348 = vmatprep.mubr.bf16.mxu1 %v4902_v57  ;;  %v4804_v57 = vld [vmem:[%s6402_s5 + $0x618] ss:$12 sps:$4 sm:$0xff]  }
 0x1f7   :  { %3282 = vmatpush1.bf16.msra.mxu0 %v4759_v32  ;;  %3326 = vmatprep.subr.bf16.mxu1 %v4800_v33 }
 0x1f8   :  { %3283 = vmatprep.subr.bf16.mxu0 %v4764_v36 }
 0x1fa   :  { %3327 = vmatpush1.bf16.msra.mxu1 %v4798_v37 }
 0x1fb   :  { %3284 = vmatpush1.bf16.msra.mxu0 %v4762_v38  ;;  %3328 = vmatprep.subr.bf16.mxu1 %v4806_v39 }
 0x1fc   :  { %3285 = vmatprep.subr.bf16.mxu0 %v4767_v40  ;;  %v4813_v40 = vld [vmem:[%s6402_s5 + $0x218] ss:$12 sps:$4 sm:$0xff]  }
 0x1fe   :  { %3329 = vmatpush1.bf16.msra.mxu1 %v4804_v57 }
 0x1ff   :  { %3286 = vmatpush1.bf16.msra.mxu0 %v4765_v41  ;;  %3330 = vmatprep.subr.bf16.mxu1 %v4811_v42  ;;  %v4816_v41 = vld [vmem:[%s6402_s5 + $0x2c0] ss:$12 sps:$4 sm:$0xff]  }
 0x200   :  { %3287 = vmatprep.subr.bf16.mxu0 %v4770_v43 }
 0x202   :  { %3331 = vmatpush1.bf16.msra.mxu1 %v4809_v44  ;;  %v4815_v44 = vld [vmem:[%s6402_s5 + $0xb0] ss:$12 sps:$4 sm:$0xff]  }
 0x203   :  { %3288 = vmatpush1.bf16.msra.mxu0 %v4768_v45  ;;  %4182 = vmatprep.subr.bf16.mxu1 %v4814_v46  ;;  %v4818_v46 = vld [vmem:[%s6402_s5 + $0x158] ss:$12 sps:$4 sm:$0xff]  }
 0x204   :  { %3289 = vmatprep.subr.bf16.mxu0 %v4773_v47 }
 0x207   :  { %3290 = vmatpush1.bf16.msra.mxu0 %v4771_v48  ;;  %v4820_v48 = vld [vmem:[%s6402_s5 + $0x2a8] ss:$12 sps:$4 sm:$0xff]  }
 0x208   :  { %3291 = vmatprep.subr.bf16.mxu0 %v4776_v50  ;;  %v4819_v50 = vld [vmem:[%s6402_s5 + $0x98] ss:$12 sps:$4 sm:$0xff]  }
 0x20b   :  { %3292 = vmatpush2.bf16.msra.mxu0 %v4774_v51  ;;  %v4821_v51 = vld [vmem:[%s6402_s5 + $0x1e8] ss:$12 sps:$4 sm:$0xff]  }
 0x20c   :  { %3293 = vmatprep.subr.bf16.mxu0 %v4779_v49  ;;  %v4822_v49 = vld [vmem:[%s6402_s5 + $0x140] ss:$12 sps:$4 sm:$0xff]  }
 0x20e   :  { %v4172_v11 = vpop.f32.mrf.mxu0 }
 0x20f   :  { %3294 = vmatpush2.bf16.msra.mxu0 %v4777_v52  ;;  %v4824_v52 = vld [vmem:[%s6402_s5 + $0x290] ss:$12 sps:$4 sm:$0xff]  }
 0x210   :  { %v4173_v56 = vpop.f32.mrf.mxu0  ;;  %3295 = vmatprep.subr.bf16.mxu0 %v4782_v54  ;;  %v4825_v54 = vld [vmem:[%s6402_s5 + $0x1d0] ss:$12 sps:$4 sm:$0xff]  }
 0x211   :  { %v4174_v32 = vadd.f32 %v4173_v56, %v4172_v11  ;;  %v4826_v11 = vld [vmem:[%s6402_s5 + $0x128] ss:$12 sps:$4 sm:$0xff]  }
 0x212   :  { %v4175_v61 = vpop.f32.mrf.mxu0  ;;  %v4827_v56 = vld [vmem:[%s6402_s5 + $0x68] ss:$12 sps:$4 sm:$0xff]  }
 0x213   :  { %3296 = vmatpush2.bf16.msra.mxu0 %v4780_v55  ;;  %v4828_v55 = vld [vmem:[%s6402_s5 + $0x278] ss:$12 sps:$4 sm:$0xff]   ;;  %v4830_v61 = vld [vmem:[%s6402_s5 + $0x110] ss:$12 sps:$4 sm:$0xff]  }
 0x214   :  { %v4176_v1 = vpop.f32.mrf.mxu0  ;;  %3297 = vmatprep.subr.bf16.mxu0 %v4785_v58  ;;  %v4829_v58 = vld [vmem:[%s6402_s5 + $0x1b8] ss:$12 sps:$4 sm:$0xff]  }
 0x215   :  { %v4831_v1 = vld [vmem:[%s6402_s5 + $0x50] ss:$12 sps:$4 sm:$0xff]  }
 0x217   :  { %3298 = vmatpush2.bf16.msra.mxu0 %v4783_v0  ;;  %v4832_v0 = vld [vmem:[%s6402_s5 + $0x260] ss:$12 sps:$4 sm:$0xff]  }
 0x218   :  { %3299 = vmatprep.subr.bf16.mxu0 %v4788_v2  ;;  %v4833_v2 = vld [vmem:[%s6402_s5 + $0x1a0] ss:$12 sps:$4 sm:$0xff]  }
 0x21b   :  { %3300 = vmatpush2.bf16.msra.mxu0 %v4786_v3  ;;  %v4834_v3 = vld [vmem:[%s6402_s5 + $0xf8] ss:$12 sps:$4 sm:$0xff]  }
 0x21c   :  { %3301 = vmatprep.subr.bf16.mxu0 %v4791_v21  ;;  %v4836_v21 = vld [vmem:[%s6402_s5 + $0x248] ss:$12 sps:$4 sm:$0xff]  }
 0x21f   :  { %3302 = vmatpush2.bf16.msra.mxu0 %v4789_v4  ;;  %v4835_v4 = vld [vmem:[%s6402_s5 + $0x38] ss:$12 sps:$4 sm:$0xff]  }
 0x220   :  { %3303 = vmatprep.subr.bf16.mxu0 %v4797_v8  ;;  %v4837_v8 = vld [vmem:[%s6402_s5 + $0x188] ss:$12 sps:$4 sm:$0xff]  }
 0x223   :  { %3304 = vmatpush2.bf16.msra.mxu0 %v4795_v9  ;;  %v4838_v9 = vld [vmem:[%s6402_s5 + $0xe0] ss:$12 sps:$4 sm:$0xff]  }
 0x224   :  { %3305 = vmatprep.subr.bf16.mxu0 %v4803_v10  ;;  %v4840_v10 = vld [vmem:[%s6402_s5 + $0x5f0] ss:$12 sps:$4 sm:$0xff]  }
 0x227   :  { %3306 = vmatpush2.bf16.msra.mxu0 %v4801_v14  ;;  %v4841_v14 = vld [vmem:[%s6402_s5 + $0x530] ss:$12 sps:$4 sm:$0xff]  }
 0x228   :  { %4204 = vmatprep.subr.bf16.mxu0 %v4807_v16  ;;  %v4844_v16 = vld [vmem:[%s6402_s5 + $0x5d8] ss:$12 sps:$4 sm:$0xff]  }
 0x229   :  { %v1625_v20 = vpop.f32.mrf.mxu1 }
 0x22a   :  { %v1626_v22 = vadd.f32 %v1625_v20, %v449_v17  ;;  %v4843_v17 = vld [vmem:[%s6402_s5 + $0x8] ss:$12 sps:$4 sm:$0xff]   ;;  %v4846_v20 = vld [vmem:[%s6402_s5 + $0x470] ss:$12 sps:$4 sm:$0xff]  }
 0x22b   :  { %v1627_v23 = vpop.f32.mrf.mxu1 }
 0x22c   :  { %v1667_v24 = vadd.f32 %v5915_v19, %v1626_v22  ;;  %v1628_v25 = vadd.f32 %v1627_v23, %v453_v18  ;;  %v4812_v19 = vld [vmem:[%s6402_s5 + $0x2d8] ss:$12 sps:$4 sm:$0xff]   ;;  %v4847_v22 = vld [vmem:[%s6402_s5 + $0x3b0] ss:$12 sps:$4 sm:$0xff]   ;;  %v4849_v23 = vld [vmem:[%s6402_s5 + $0x500] ss:$12 sps:$4 sm:$0xff]  }
 0x22d   :  { %v1629_v28 = vpop.f32.mrf.mxu1  ;;  %v4845_v18 = vld [vmem:[%s6402_s5 + $0x518] ss:$12 sps:$4 sm:$0xff]  }
 0x22e   :  { %v1669_v59 = vadd.f32 %v5928_v27, %v1628_v25  ;;  %v1759_v29 = vmax.f32 %v1667_v24, 0.0  ;;  %v1708_v27 = vadd.f32 %v4174_v32, %v3765_v34  ;;  %v4850_v24 = vld [vmem:[%s6402_s5 + $0x458] ss:$12 sps:$4 sm:$0xff]   ;;  %v4852_v25 = vld [vmem:[%s6402_s5 + $0x5a8] ss:$12 sps:$4 sm:$0xff]  }
 0x22f   :  { %v1630_v30 = vpop.f32.mrf.mxu1  ;;  %v4851_v28 = vld [vmem:[%s6402_s5 + $0x398] ss:$12 sps:$4 sm:$0xff]   ;;  %v4858_v32 = vld [vmem:[%s6402_s5 + $0x428] ss:$12 sps:$4 sm:$0xff]  }
 0x230   :  { %v1760_v33 = vmax.f32 %v1669_v59, 0.0  ;;  %v6054_v37 = vpack.c.bf16 %v1759_v29, %v1759_v29  ;;  %v4853_v59 = vld [vmem:[%s6402_s5 + $0x4e8] ss:$12 sps:$4 sm:$0xff]   ;;  %v4854_v29 = vld [vmem:[%s6402_s5 + $0x440] ss:$12 sps:$4 sm:$0xff]  }
 0x231   :  { %v4857_v30 = vld [vmem:[%s6402_s5 + $0x4d0] ss:$12 sps:$4 sm:$0xff]   ;;  %v4859_v34 = vld [vmem:[%s6402_s5 + $0x368] ss:$12 sps:$4 sm:$0xff]  }
 0x232   :  { %v6049_v36 = vpack.c.bf16 %v1760_v33, %v1760_v33  ;;  %v4860_v33 = vld [vmem:[%s6402_s5 + $0x578] ss:$12 sps:$4 sm:$0xff]  }
 0x234   :  { %3307 = vmatprep.mubr.bf16.mxu0 %v6049_v36 }
 0x235   :  { %v1747_v38 = vpop.f32.mrf.mxu1  ;;  %3308 = vmatmul.mubr.bf16.vlgmr.msra.gmra.mxu0 %v6054_v37 }
 0x236   :  { %v1748_v39 = vadd.f32 %v1747_v38, %v1708_v27  ;;  %4205 = vmatpush3.bf16.msra.mxu0 %v4808_v35  ;;  %3429 = vmatprep.mubr.bf16.mxu0 %v5884_v13  ;;  %v4817_v13 = vld [vmem:[%s6402_s5 + $0x200] ss:$12 sps:$4 sm:$0xff]   ;;  %v4862_v35 = vld [vmem:[%s6402_s5 + $0x410] ss:$12 sps:$4 sm:$0xff]  }
 0x237   :  { %v4334_v57 = vpop.f32.mrf.mxu1  ;;  %4206 = vmatprep.subr.bf16.mxu0 %v4812_v19  ;;  %v4864_v19 = vld [vmem:[%s6402_s5 + $0x560] ss:$12 sps:$4 sm:$0xff]   ;;  %v4863_v27 = vld [vmem:[%s6402_s5 + $0x350] ss:$12 sps:$4 sm:$0xff]  }
 0x238   :  { %v1761_v42 = vmax.f32 %v1748_v39, 0.0  ;;  %v4865_v38 = vld [vmem:[%s6402_s5 + $0x4a0] ss:$12 sps:$4 sm:$0xff]   ;;  %v4866_v39 = vld [vmem:[%s6402_s5 + $0x3f8] ss:$12 sps:$4 sm:$0xff]  }
 0x239   :  { %v1750_v43 = vpop.f32.mrf.mxu1  ;;  %v4867_v57 = vld [vmem:[%s6402_s5 + $0x338] ss:$12 sps:$4 sm:$0xff]  }
 0x23a   :  { %v6071_v45 = vpack.c.bf16 %v1761_v42, %v1761_v42  ;;  %4207 = vmatpush3.bf16.msra.mxu0 %v4813_v40  ;;  %v4868_v40 = vld [vmem:[%s6402_s5 + $0x548] ss:$12 sps:$4 sm:$0xff]   ;;  %v4870_v42 = vld [vmem:[%s6402_s5 + $0x3e0] ss:$12 sps:$4 sm:$0xff]   ;;  %v3591_v43 = vld [vmem:[%s6404_s7 + $0xf8] sm:$0xff] }
 0x23b   :  { %v4335_v47 = vpop.f32.mrf.mxu1  ;;  %4208 = vmatprep.subr.bf16.mxu0 %v4816_v41  ;;  %v4869_v41 = vld [vmem:[%s6402_s5 + $0x488] ss:$12 sps:$4 sm:$0xff]  }
 0x23c   :  { %4146 = vmatmul.mubr.msk.bf16.vlgmr.msra.gmra.mxu1 %vm3148_vm4, %v6071_v45  ;;  %v3590_v47 = vld [vmem:[%s6404_s7 + $0xf0] sm:$0xff] }
 0x23d   :  { %4183 = vmatpush3.bf16.msra.mxu1 %v4815_v44  ;;  %3389 = vmatprep.mubr.bf16.mxu1 %v5769_v53  ;;  %v4823_v53 = vld [vmem:[%s6402_s5 + $0x80] ss:$12 sps:$4 sm:$0xff]  }
 0x23e   :  { %4209 = vmatpush3.bf16.msra.mxu0 %v4817_v13  ;;  %4184 = vmatprep.subr.bf16.mxu1 %v4818_v46  ;;  %v4871_v44 = vld [vmem:[%s6402_s5 + $0x320] ss:$12 sps:$4 sm:$0xff]   ;;  %v4872_v13 = vld [vmem:[%s6402_s5 + $0x3c8] ss:$12 sps:$4 sm:$0xff]   ;;  %v3575_v46 = vld [vmem:[%s6404_s7 + $0x78] sm:$0xff] }
 0x23f   :  { %4210 = vmatprep.subr.bf16.mxu0 %v4820_v48 }
 0x241   :  { %4185 = vmatpush3.bf16.msra.mxu1 %v4819_v50  ;;  %v4873_v50 = vld [vmem:[%s6402_s5 + $0x308] ss:$12 sps:$4 sm:$0xff]  }
 0x242   :  { %4211 = vmatpush3.bf16.msra.mxu0 %v4821_v51  ;;  %4186 = vmatprep.subr.bf16.mxu1 %v4822_v49  ;;  %v3574_v51 = vld [vmem:[%s6404_s7 + $0x70] sm:$0xff]  ;;  %v3589_v49 = vld [vmem:[%s6404_s7 + $0xe8] sm:$0xff] }
 0x243   :  { %4212 = vmatprep.subr.bf16.mxu0 %v4824_v52 }
 0x245   :  { %4187 = vmatpush3.bf16.msra.mxu1 %v4823_v53  ;;  %v3588_v53 = vld [vmem:[%s6404_s7 + $0xe0] sm:$0xff] }
 0x246   :  { %4213 = vmatpush3.bf16.msra.mxu0 %v4825_v54  ;;  %4188 = vmatprep.subr.bf16.mxu1 %v4826_v11  ;;  %v4874_v11 = vld [vmem:[%s6402_s5 + $0x650] ss:$12 sps:$4 sm:$0xff]  }
 0x247   :  { %4214 = vmatprep.subr.bf16.mxu0 %v4828_v55  ;;  %v3572_v55 = vld [vmem:[%s6404_s7 + $0x60] sm:$0xff] }
 0x249   :  { %4189 = vmatpush3.bf16.msra.mxu1 %v4827_v56 }
 0x24a   :  { %4215 = vmatpush3.bf16.msra.mxu0 %v4829_v58  ;;  %4190 = vmatprep.subr.bf16.mxu1 %v4830_v61  ;;  %v3587_v58 = vld [vmem:[%s6404_s7 + $0xd8] sm:$0xff] }
 0x24b   :  { %4216 = vmatprep.subr.bf16.mxu0 %v4832_v0  ;;  %v3571_v61 = vld [vmem:[%s6404_s7 + $0x58] sm:$0xff] }
 0x24c   :  { %v4875_v0 = vld [vmem:[%s6402_s5 + $0x638] ss:$12 sps:$4 sm:$0xff]  }
 0x24d   :  { %4191 = vmatpush3.bf16.msra.mxu1 %v4831_v1  ;;  %v3586_v1 = vld [vmem:[%s6404_s7 + $0xd0] sm:$0xff] }
 0x24e   :  { %4217 = vmatpush3.bf16.msra.mxu0 %v4833_v2  ;;  %4192 = vmatprep.subr.bf16.mxu1 %v4834_v3  ;;  %v3585_v2 = vld [vmem:[%s6404_s7 + $0xc8] sm:$0xff] }
 0x24f   :  { %4218 = vmatprep.subr.bf16.mxu0 %v4836_v21  ;;  %v3569_v3 = vld [vmem:[%s6404_s7 + $0x48] sm:$0xff] }
 0x250   :  { %v4876_v21 = vld [vmem:[%s6402_s5 + $0x620] ss:$12 sps:$4 sm:$0xff]  }
 0x251   :  { %4193 = vmatpush3.bf16.msra.mxu1 %v4835_v4  ;;  %v3584_v4 = vld [vmem:[%s6404_s7 + $0xc0] sm:$0xff] }
 0x252   :  { %4219 = vmatpush3.bf16.msra.mxu0 %v4837_v8  ;;  %4194 = vmatprep.subr.bf16.mxu1 %v4838_v9  ;;  %v3568_v8 = vld [vmem:[%s6404_s7 + $0x40] sm:$0xff]  ;;  %v3583_v9 = vld [vmem:[%s6404_s7 + $0xb8] sm:$0xff] }
 0x253   :  { %4248 = vmatprep.subr.bf16.mxu0 %v4840_v10  ;;  %v3567_v10 = vld [vmem:[%s6404_s7 + $0x38] sm:$0xff] }
 0x255   :  { %4195 = vmatpush3.bf16.msra.mxu1 %v4839_v12  ;;  %3430 = vmatmul.mubr.bf16.vlgmr.msra.gmra.mxu0 %v5893_v63  ;;  %v4848_v63 = vld [vmem:[%s6402_s5 + $0x5c0] ss:$12 sps:$4 sm:$0xff]   ;;  %v4877_v12 = vld [vmem:[%s6402_s5 + $0x608] ss:$12 sps:$4 sm:$0xff]  }
 0x256   :  { %4249 = vmatpush3.bf16.msra.mxu0 %v4841_v14  ;;  %3509 = vmatprep.mubr.bf16.mxu0 %v6049_v36  ;;  %v4861_v36 = vld [vmem:[%s6402_s5 + $0x4b8] ss:$12 sps:$4 sm:$0xff]   ;;  %v3582_v14 = vld [vmem:[%s6404_s7 + $0xb0] sm:$0xff] }
 0x257   :  { %4196 = vmatprep.subr.bf16.mxu1 %v4842_v15  ;;  %4250 = vmatprep.subr.bf16.mxu0 %v4844_v16  ;;  %v3566_v15 = vld [vmem:[%s6404_s7 + $0x30] sm:$0xff]  ;;  %v3581_v16 = vld [vmem:[%s6404_s7 + $0xa8] sm:$0xff] }
 0x259   :  { %4197 = vmatpush3.bf16.msra.mxu1 %v4843_v17  ;;  %v3565_v17 = vld [vmem:[%s6404_s7 + $0x28] sm:$0xff] }
 0x25a   :  { %4251 = vmatpush3.bf16.msra.mxu0 %v4845_v18  ;;  %4226 = vmatprep.subr.bf16.mxu1 %v4846_v20  ;;  %v3580_v18 = vld [vmem:[%s6404_s7 + $0xa0] sm:$0xff] }
 0x25b   :  { %4252 = vmatprep.subr.bf16.mxu0 %v4848_v63  ;;  %v3564_v20 = vld [vmem:[%s6404_s7 + $0x20] sm:$0xff]  ;;  %v3579_v63 = vld [vmem:[%s6404_s7 + $0x98] sm:$0xff] }
 0x25c   :  { %3390 = vmatmul.mubr.bf16.vlgmr.msra.gmra.mxu1 %v5797_v6  ;;  %v4856_v6 = vld [vmem:[%s6402_s5 + $0x590] ss:$12 sps:$4 sm:$0xff]  }
 0x25d   :  { %4227 = vmatpush3.bf16.msra.mxu1 %v4847_v22  ;;  %3469 = vmatprep.mubr.bf16.mxu1 %v5926_v26  ;;  %v4855_v26 = vld [vmem:[%s6402_s5 + $0x380] ss:$12 sps:$4 sm:$0xff]   ;;  %v3563_v22 = vld [vmem:[%s6404_s7 + $0x18] sm:$0xff]  ;;  %s4903_s5 = smov [#allocation2]  }
 0x25e   :  { %4253 = vmatpush3.bf16.msra.mxu0 %v4849_v23  ;;  %4228 = vmatprep.subr.bf16.mxu1 %v4850_v24  ;;  %v3578_v23 = vld [vmem:[%s6404_s7 + $0x90] sm:$0xff]  ;;  %s3752_s29 = sshll.u32 %s4903_s5, 4  ;;  %s3753_s29 = int_to_ptr.vmem [resolvable:$true] %s3752_s29 }
 0x25f   :  { %4254 = vmatprep.subr.bf16.mxu0 %v4852_v25  ;;  %v3562_v24 = vld [vmem:[%s6404_s7 + $0x10] sm:$0xff]  ;;  %v3561_v25 = vld [vmem:[%s6404_s7 + $0x8] sm:$0xff]  ;;  %s4878_s30 = scalar_lea.vmem %s3753_s29, 128  ;;  %p4883_p1 = scmp.lt.s32.totalorder %s3753_s29, %s3753_s29 }
 0x260   :  { %p4879_p0 = scmp.ne.s32.totalorder %s3753_s29, %s4878_s30  ;;  %p4884_p2 = scmp.lt.s32.totalorder %s4878_s30, %s4878_s30 }
 0x261   :  { %4229 = vmatpush3.bf16.msra.mxu1 %v4851_v28  ;;  %v3576_v28 = vld [vmem:[%s6404_s7 + $0x80] sm:$0xff] }
 0x262   :  { %4255 = vmatpush3.bf16.msra.mxu0 %v4853_v59  ;;  %4230 = vmatprep.subr.bf16.mxu1 %v4854_v29  ;;  %v3560_v59 = vld [vmem:[%s6404_s7] sm:$0xff]  ;;  %p4885_p3 = por %p4884_p2, %p4883_p1 }
 0x263   :  { %4256 = vmatprep.subr.bf16.mxu0 %v4856_v6  ;;  %v2043_v29 = vld [vmem:[%s6403_s6] sm:$0x7] }
 0x264   :  { %v2048_v6 = vrot.slane %v2043_v29, %v5139_v60  ;;  %p4886_p4 = pnand %p4885_p3, %p4879_p0 }
 0x265   :  { %4231 = vmatpush3.bf16.msra.mxu1 %v4855_v26  ;;  %v2052_v26 = vrot.slane %v2043_v29, %v5145_v62 }
 0x266   :  { %4257 = vmatpush3.bf16.msra.mxu0 %v4857_v30  ;;  %4232 = vmatprep.subr.bf16.mxu1 %v4858_v32 }
 0x267   :  { %4258 = vmatprep.subr.bf16.mxu0 %v4860_v33 }
 0x269   :  { %4233 = vmatpush3.bf16.msra.mxu1 %v4859_v34 }
 0x26a   :  { %4259 = vmatpush3.bf16.msra.mxu0 %v4861_v36  ;;  %4234 = vmatprep.subr.bf16.mxu1 %v4862_v35 }
 0x26b   :  { %4260 = vmatprep.subr.bf16.mxu0 %v4864_v19 }
 0x26d   :  { %4235 = vmatpush3.bf16.msra.mxu1 %v4863_v27 }
 0x26e   :  { %4261 = vmatpush3.bf16.msra.mxu0 %v4865_v38  ;;  %4236 = vmatprep.subr.bf16.mxu1 %v4866_v39 }
 0x26f   :  { %4262 = vmatprep.subr.bf16.mxu0 %v4868_v40 }
 0x271   :  { %4237 = vmatpush3.bf16.msra.mxu1 %v4867_v57 }
 0x272   :  { %4263 = vmatpush3.bf16.msra.mxu0 %v4869_v41  ;;  %4238 = vmatprep.subr.bf16.mxu1 %v4870_v42 }
 0x273   :  { %4275 = vmatprep.subr.mxu0 %v3591_v43 }
 0x275   :  { %4239 = vmatpush3.bf16.msra.mxu1 %v4871_v44  ;;  %3510 = vmatmul.mubr.bf16.vlgmr.msra.gmra.mxu0 %v6054_v37  ;;  %v6258_v48 = vpop.f32.mrf.mxu1  ;;  %v3573_v37 = vld [vmem:[%s6404_s7 + $0x68] sm:$0xff] }
 0x276   :  { %4240 = vmatprep.subr.bf16.mxu1 %v4872_v13  ;;  %4276 = vmatpush3.msra.mxu0 %v3575_v46  ;;  %v3187_v30 = vadd.f32 %v6258_v48, %v2048_v6 }
 0x277   :  { %v6269_v52 = vpop.f32.mrf.mxu1  ;;  %4277 = vmatprep.subr.mxu0 %v3590_v47 }
 0x278   :  { %4278 = vmatpush3.msra.mxu0 %v3574_v51  ;;  %v3189_v33 = vadd.f32 %v6269_v52, %v2052_v26 }
 0x279   :  { %4241 = vmatpush3.bf16.msra.mxu1 %v4873_v50  ;;  %v3190_v54 = vpop.f32.mrf.mxu1  ;;  %4279 = vmatprep.subr.mxu0 %v3589_v49 }
 0x27a   :  { %4336 = vmatprep.subr.bf16.mxu1 %v4900_v5  ;;  %4280 = vmatpush3.msra.mxu0 %v3573_v37  ;;  %v3593_v54 = vld [vmem:[%s6404_s7 + $0x108] sm:$0xff] }
 0x27b   :  { %v3191_v56 = vpop.f32.mrf.mxu1  ;;  %4281 = vmatprep.subr.mxu0 %v3588_v53 }
 0x27c   :  { %3470 = vmatmul.mubr.bf16.vlgmr.msra.gmra.mxu1 %v5937_v31  ;;  %4282 = vmatpush3.msra.mxu0 %v3572_v55  ;;  %v3570_v31 = vld [vmem:[%s6404_s7 + $0x50] sm:$0xff] }
 0x27d   :  { %4337 = vmatpush3.bf16.msra.mxu1 %v4874_v11  ;;  %4344 = vmatprep.mubr.msk.bf16.mxu1 %vm4901_vm2, %v4900_v5  ;;  %v3592_v11 = vld [vmem:[%s6404_s7 + $0x100] sm:$0xff] }
 0x27e   :  { %4338 = vmatprep.subr.bf16.mxu1 %v4900_v5  ;;  %4283 = vmatprep.subr.mxu0 %v3587_v58 }
 0x27f   :  { %4284 = vmatpush3.msra.mxu0 %v3571_v61 }
 0x280   :  { %4285 = vmatprep.subr.mxu0 %v3586_v1 }
 0x281   :  { %4339 = vmatpush3.bf16.msra.mxu1 %v4875_v0  ;;  %4286 = vmatpush3.msra.mxu0 %v3570_v31 }
 0x282   :  { %4340 = vmatprep.subr.bf16.mxu1 %v4900_v5  ;;  %4287 = vmatprep.subr.mxu0 %v3585_v2 }
 0x283   :  { %4288 = vmatpush3.msra.mxu0 %v3569_v3 }
 0x284   :  { %4289 = vmatprep.subr.mxu0 %v3584_v4 }
 0x285   :  { %4341 = vmatpush3.bf16.msra.mxu1 %v4876_v21  ;;  %4290 = vmatpush3.msra.mxu0 %v3568_v8 }
 0x286   :  { %4342 = vmatprep.subr.bf16.mxu1 %v4900_v5  ;;  %4291 = vmatprep.subr.mxu0 %v3583_v9 }
 0x287   :  { %4292 = vmatpush3.msra.mxu0 %v3567_v10  ;;  %v2056_v10 = vrot.slane %v2043_v29, %v5150_v7 }
 0x288   :  { %4293 = vmatprep.subr.mxu0 %v3582_v14 }
 0x289   :  { %4343 = vmatpush3.bf16.msra.mxu1 %v4877_v12  ;;  %4294 = vmatpush3.msra.mxu0 %v3566_v15 }
 0x28a   :  { %4295 = vmatprep.subr.mxu0 %v3581_v16 }
 0x28b   :  { %4296 = vmatpush3.msra.mxu0 %v3565_v17 }
 0x28c   :  { %4345 = vmatmul.mubr.msk.bf16.vlgmr.msra.gmra.mxu1 %vm3148_vm4, %v6071_v45  ;;  %4297 = vmatprep.subr.mxu0 %v3580_v18  ;;  %v3577_v45 = vld [vmem:[%s6404_s7 + $0x88] sm:$0xff] }
 0x28d   :  { %4298 = vmatpush3.msra.mxu0 %v3564_v20 }
 0x28e   :  { %4299 = vmatprep.subr.mxu0 %v3579_v63 }
 0x28f   :  { %4300 = vmatpush3.msra.mxu0 %v3563_v22 }
 0x290   :  { %4301 = vmatprep.subr.mxu0 %v3578_v23 }
 0x291   :  { %4302 = vmatpush3.msra.mxu0 %v3562_v24 }
 0x292   :  { %4303 = vmatprep.subr.mxu0 %v3577_v45 }
 0x293   :  { %4304 = vmatpush3.msra.mxu0 %v3561_v25 }
 0x294   :  { %4305 = vmatprep.subr.mxu0 %v3576_v28 }
 0x295   :  { %4306 = vmatpush3.msra.mxu0 %v3560_v59 }
 0x296   :  { %4348 = vmatprep.subr.mxu0 %v4900_v5 }
 0x2a9   :  { %v3227_v32 = vpop.f32.mrf.mxu0 }
 0x2aa   :  { %v3228_v34 = vadd.f32 %v3227_v32, %v3187_v30  ;;  %v4148_v30 = vld [vmem:[%s6405_s8] ss:$0 sm:$0xff] }
 0x2ab   :  { %v3229_v36 = vpop.f32.mrf.mxu0 }
 0x2ac   :  { %v3230_v35 = vadd.f32 %v3229_v36, %v3189_v33 }
 0x2ad   :  { %v3231_v19 = vpop.f32.mrf.mxu0 }
 0x2af   :  { %v3232_v27 = vpop.f32.mrf.mxu0 }
 0x2b5   :  { %v3268_v38 = vpop.f32.mrf.mxu1 }
 0x2b6   :  { %v3269_v39 = vadd.f32 %v3268_v38, %v3228_v34 }
 0x2b7   :  { %v3270_v40 = vpop.f32.mrf.mxu1 }
 0x2b8   :  { %v3271_v57 = vadd.f32 %v3270_v40, %v3230_v35 }
 0x2b9   :  { %v3272_v41 = vpop.f32.mrf.mxu1 }
 0x2bb   :  { %v3273_v42 = vpop.f32.mrf.mxu1 }
 0x2f5   :  { %v3309_v43 = vpop.f32.mrf.mxu0 }
 0x2f6   :  { %v3310_v13 = vadd.f32 %v3309_v43, %v3269_v39 }
 0x2f7   :  { %v3311_v60 = vpop.f32.mrf.mxu0 }
 0x2f8   :  { %v3312_v47 = vadd.f32 %v3311_v60, %v3271_v57 }
 0x2f9   :  { %v3313_v44 = vpop.f32.mrf.mxu0 }
 0x2fb   :  { %v3314_v62 = vpop.f32.mrf.mxu0 }
 0x2fc   :  { %v3350_v46 = vpop.f32.mrf.mxu1 }
 0x2fd   :  { %v3351_v48 = vadd.f32 %v3350_v46, %v3310_v13 }
 0x2fe   :  { %v3352_v50 = vpop.f32.mrf.mxu1 }
 0x2ff   :  { %v3353_v51 = vadd.f32 %v3352_v50, %v3312_v47  ;;  %v3557_v37 = vmax.f32 %v3351_v48, 0.0 }
 0x300   :  { %v3354_v49 = vpop.f32.mrf.mxu1 }
 0x301   :  { %v3558_v52 = vmax.f32 %v3353_v51, 0.0 }
 0x302   :  { %v3355_v53 = vpop.f32.mrf.mxu1 }
 0x303   :  { %3669 = vmatprep.mubr.f32.mxu0 %v3558_v52 }
 0x304   :  { %3670 = vmatmul.mubr.f32.vlgmr.msra.gmra.mxu0 %v3557_v37 }
 0x305   :  { %4349 = vmatpush3.msra.mxu0 %v3593_v54  ;;  %4352 = vmatprep.mubr.msk.f32.mxu0 %vm4901_vm2, %v4900_v5 }
 0x306   :  { %4350 = vmatprep.subr.mxu0 %v4900_v5 }
 0x307   :  { %4351 = vmatpush3.msra.mxu0 %v3592_v11 }
 0x315   :  { %v4220_v55 = vpop.f32.mrf.mxu0 }
 0x317   :  { %v4221_v56 = vpop.f32.mrf.mxu0 }
 0x318   :  { %v4222_v17 = vadd.f32 %v4221_v56, %v4220_v55 }
 0x319   :  { %v4223_v58 = vpop.f32.mrf.mxu0 }
 0x31b   :  { %v4224_v61 = vpop.f32.mrf.mxu0 }
 0x31c   :  { %v4198_v0 = vpop.f32.mrf.mxu1 }
 0x31e   :  { %v4199_v1 = vpop.f32.mrf.mxu1 }
 0x31f   :  { %v4200_v12 = vadd.f32 %v4199_v1, %v4198_v0 }
 0x320   :  { %v4201_v31 = vpop.f32.mrf.mxu1 }
 0x321   :  { %v3392_v5 = vadd.f32 %v4200_v12, %v2056_v10 }
 0x322   :  { %v4202_v2 = vpop.f32.mrf.mxu1 }
 0x323   :  { %v3432_v20 = vadd.f32 %v4222_v17, %v3392_v5 }
 0x335   :  { %v4264_v3 = vpop.f32.mrf.mxu0 }
 0x337   :  { %v4265_v21 = vpop.f32.mrf.mxu0 }
 0x338   :  { %v4266_v22 = vadd.f32 %v4265_v21, %v4264_v3 }
 0x339   :  { %v4267_v4 = vpop.f32.mrf.mxu0 }
 0x33b   :  { %v4268_v8 = vpop.f32.mrf.mxu0 }
 0x33c   :  { %v4242_v9 = vpop.f32.mrf.mxu1 }
 0x33e   :  { %v4243_v14 = vpop.f32.mrf.mxu1 }
 0x33f   :  { %v4244_v18 = vadd.f32 %v4243_v14, %v4242_v9 }
 0x340   :  { %v4245_v15 = vpop.f32.mrf.mxu1 }
 0x341   :  { %v3472_v63 = vadd.f32 %v4244_v18, %v3432_v20 }
 0x342   :  { %v4246_v16 = vpop.f32.mrf.mxu1 }
 0x343   :  { %v3512_v23 = vadd.f32 %v4266_v22, %v3472_v63 }
 0x34c   :  { %v3551_v24 = vpop.f32.mrf.mxu1 }
 0x34d   :  { %v3552_v45 = vadd.f32 %v3551_v24, %v3512_v23 }
 0x34e   :  { %v4346_v25 = vpop.f32.mrf.mxu1 }
 0x34f   :  { %v3559_v28 = vmax.f32 %v3552_v45, 0.0 }
 0x350   :  { %v3554_v59 = vpop.f32.mrf.mxu1 }
 0x351   :  { %4353 = vmatmul.mubr.msk.f32.vlgmr.msra.gmra.mxu0 %vm3601_vm5, %v3559_v28 }
 0x352   :  { %v4347_v6 = vpop.f32.mrf.mxu1 }
 0x3c4   :  { %v4307_v7 = vpop.f32.mrf.mxu0 }
 0x3c6   :  { %v4308_v29 = vpop.f32.mrf.mxu0 }
 0x3c7   :  { %v4309_v26 = vadd.f32 %v4308_v29, %v4307_v7 }
 0x3c9   :  { %v3672_v32 = vadd.f32 %v4309_v26, %v4148_v30 }
 0x411   :  { %v3741_v33 = vpop.f32.mrf.mxu0 }
 0x412   :  { %v3742_v34 = vadd.f32 %v3741_v33, %v3672_v32 }
 0x413   :  { %v4354_v36 = vpop.f32.mrf.mxu0 }
 0x414   :  { %3745 = vst [vmem:[#allocation2] sm:$0xff] %v3742_v34 }
 0x415   :  { %4889 = shalt.err (!%p4886_p4)
}
 0x416   :  { %3755 = dma.vmem_to_hbm [thread:$0]  %s3753_s29, 128, %s6406_s9, [#allocation3]  }
 0x417   :  { %4898 = dma.done.wait [#allocation3], 128  }
 0x418   :  { %4899 = vsyncadd [#allocation3], 4294967168 }
 0x419   :  { %3759 = vsyncpa [#allocation3], 1 }

</bundles_post_ra>
